<compile_context>
chip_gen: v5e
topology: v5e:2x2
jax: 0.10.0
libtpu: 0.0.40
codegen_flags: <defaults>
</compile_context>

<pallas_src>
import jax
import jax.numpy as jnp
from jax.experimental import pallas as pl
from jax.experimental.pallas import tpu as pltpu

# ----------------------------- problem configuration -----------------------------
N_CLASSES = 4      # opt.n_classes
CHANNELS = 1       # opt.channels
IMG_SIZE = 8       # opt.img_size
IMG_PROD = CHANNELS * IMG_SIZE * IMG_SIZE          # 64
HID = 512
MAX_TILE_B = 256                                   # batch tile upper bound (multiple of 16)


# --------------------------------- Pallas kernel ----------------------------------
def _discriminator_kernel(x_ref, rb1_ref,
                          w1_ref, w2_ref, b2_ref, w3_ref, b3_ref,
                          w4_ref, b4_ref,
                          out_ref):
    f32 = jnp.float32
    bf16 = jnp.bfloat16

    def lrelu(x):
        return jnp.where(x > 0, x, 0.2 * x)        # LeakyReLU(0.2), f32 on the VPU

    # Layer 1: (tile_b, 64) bf16 @ (64, 512) bf16 -> f32 accumulate.
    # The label-embedding contribution + b1 is pre-folded into the per-row bias rb1.
    h = jnp.dot(x_ref[...], w1_ref[...], preferred_element_type=f32) + rb1_ref[...]
    h = lrelu(h)

    # Linear(512, 512) + Dropout(0.4)[identity, eval mode] + LeakyReLU(0.2)
    h = jnp.dot(h.astype(bf16), w2_ref[...], preferred_element_type=f32) + b2_ref[...]
    h = lrelu(h)

    h = jnp.dot(h.astype(bf16), w3_ref[...], preferred_element_type=f32) + b3_ref[...]
    h = lrelu(h)

    # Final Linear(512, 1): broadcast multiply + lane reduction (rides the XLU slot),
    # storing a true (tile_b, 1) f32 output -- no 128-lane zero padding.
    w4_row = w4_ref[...].astype(f32)                               # (1, 512)
    out_ref[...] = jnp.sum(h * w4_row, axis=-1, keepdims=True) + b4_ref[...]


# --------------------------------- wrapper / glue ----------------------------------
def init_params(key):
    """Deterministic parameter init (shapes match the PyTorch module)."""
    ks = jax.random.split(key, 10)
    f32, bf16 = jnp.float32, jnp.bfloat16

    def lin(kw, kb, fan_in, fan_out):
        scale = 1.0 / jnp.sqrt(jnp.float32(fan_in))
        w = jax.random.uniform(kw, (fan_in, fan_out), f32, -scale, scale)
        b = jax.random.uniform(kb, (1, fan_out), f32, -scale, scale)
        return w, b

    params = {}
    # nn.Embedding(n_classes, n_classes) ~ N(0, 1)
    emb = jax.random.normal(ks[0], (N_CLASSES, N_CLASSES), f32)
    params["emb"] = emb

    # Layer 1: Linear(IMG_PROD + n_classes, 512). Image part kept as bf16 kernel weight;
    # embedding part folded offline: emb_w1[label] (f32) is added to b1 per row.
    w1, b1 = lin(ks[1], ks[2], IMG_PROD + N_CLASSES, HID)
    params["w1_img"] = w1[:IMG_PROD].astype(bf16)                  # (64, 512) bf16
    params["emb_w1"] = jnp.dot(emb, w1[IMG_PROD:])                 # (4, 512)  f32
    params["b1"] = b1                                              # (1, 512)  f32

    # Layers 2 & 3: Linear(512, 512)
    w2, b2 = lin(ks[3], ks[4], HID, HID)
    params["w2"] = w2.astype(bf16)
    params["b2"] = b2
    w3, b3 = lin(ks[5], ks[6], HID, HID)
    params["w3"] = w3.astype(bf16)
    params["b3"] = b3

    # Layer 4: Linear(512, 1), stored transposed as a (1, 512) bf16 row.
    w4, b4 = lin(ks[7], ks[8], HID, 1)
    params["w4t"] = w4.T.astype(bf16)                              # (1, 512) bf16
    params["b4"] = b4.reshape(1, 1)                                # (1, 1)   f32
    return params


def _round_up(x, m):
    return (x + m - 1) // m * m


@jax.jit
def discriminator_forward(img, labels, params):
    B = img.shape[0]
    f32, bf16 = jnp.float32, jnp.bfloat16

    # Glue (matches PyTorch forward): flatten image; fold label embedding into a
    # per-row layer-1 bias instead of concatenating a 4-wide column.
    img_flat = img.reshape(B, IMG_PROD).astype(bf16)               # (B, 64) bf16
    rb1 = params["b1"] + params["emb_w1"][labels]                  # (B, 512) f32

    # Batch tiling: pad rows to a multiple of 16 (bf16 sublane packing), tile <= 256.
    tile_b = min(MAX_TILE_B, _round_up(B, 16))
    b_pad = _round_up(B, tile_b)
    if b_pad != B:
        img_flat = jnp.pad(img_flat, ((0, b_pad - B), (0, 0)))
        rb1 = jnp.pad(rb1, ((0, b_pad - B), (0, 0)))

    def batch_spec(shape):                   # per-step activation tile
        return pl.BlockSpec(shape, lambda i: (i, 0))

    def resident_spec(shape):                # weights stay on block 0 for every step
        return pl.BlockSpec(shape, lambda i: (0, 0))

    out = pl.pallas_call(
        _discriminator_kernel,
        out_shape=jax.ShapeDtypeStruct((b_pad, 1), f32),
        grid_spec=pltpu.PrefetchScalarGridSpec(
            num_scalar_prefetch=0,
            grid=(b_pad // tile_b,),
            in_specs=[
                batch_spec((tile_b, IMG_PROD)),       # img_flat
                batch_spec((tile_b, HID)),            # per-row bias (b1 + emb_w1[labels])
                resident_spec((IMG_PROD, HID)),       # w1_img
                resident_spec((HID, HID)),            # w2
                resident_spec((1, HID)),              # b2
                resident_spec((HID, HID)),            # w3
                resident_spec((1, HID)),              # b3
                resident_spec((1, HID)),              # w4 row (transposed)
                resident_spec((1, 1)),                # b4
            ],
            out_specs=batch_spec((tile_b, 1)),
        ),
        compiler_params=pltpu.CompilerParams(
            dimension_semantics=("parallel",),        # v7x: both TCs split the batch
            vmem_limit_bytes=8 * 1024 * 1024,
        ),
    )(img_flat, rb1,
      params["w1_img"], params["w2"], params["b2"],
      params["w3"], params["b3"], params["w4t"], params["b4"])

    return out[:B]                                                 # (B, 1)


# --------------------------------- pure-JAX reference ------------------------------
def discriminator_reference(img, labels, params):
    B = img.shape[0]
    f32, bf16 = jnp.float32, jnp.bfloat16
    x = img.reshape(B, IMG_PROD).astype(bf16)
    rb1 = params["b1"] + params["emb_w1"][labels]

    h = jnp.dot(x, params["w1_img"], preferred_element_type=f32) + rb1
    h = jnp.where(h > 0, h, 0.2 * h)
    h = jnp.dot(h.astype(bf16), params["w2"], preferred_element_type=f32) + params["b2"]
    h = jnp.where(h > 0, h, 0.2 * h)
    h = jnp.dot(h.astype(bf16), params["w3"], preferred_element_type=f32) + params["b3"]
    h = jnp.where(h > 0, h, 0.2 * h)
    w4_row = params["w4t"].astype(f32)
    return jnp.sum(h * w4_row, axis=-1, keepdims=True) + params["b4"]


if __name__ == "__main__":
    key = jax.random.PRNGKey(0)
    k_params, k_img, k_labels = jax.random.split(key, 3)

    B = 8
    params = init_params(k_params)
    img = jax.random.uniform(k_img, (B, CHANNELS, IMG_SIZE, IMG_SIZE),
                             jnp.float32, -1.0, 1.0)
    labels = jax.random.randint(k_labels, (B,), 0, N_CLASSES, dtype=jnp.int32)

    validity = discriminator_forward(img, labels, params)
    validity = jax.block_until_ready(validity)
    assert validity.shape == (B, 1), validity.shape

    ref = discriminator_reference(img, labels, params)
    assert jnp.allclose(validity, ref, rtol=1e-2, atol=1e-2), \
        float(jnp.max(jnp.abs(validity - ref)))

    print("KERNEL_OK")
</pallas_src>

<mosaic_0001>
module attributes {stable_mosaic.version = 11 : i64} {
  func.func @_discriminator_kernel(%arg0: i32, %arg1: memref<16x64xbf16, #tpu.memory_space<vmem>>, %arg2: memref<16x512xf32, #tpu.memory_space<vmem>>, %arg3: memref<64x512xbf16, #tpu.memory_space<vmem>>, %arg4: memref<512x512xbf16, #tpu.memory_space<vmem>>, %arg5: memref<1x512xf32, #tpu.memory_space<vmem>>, %arg6: memref<512x512xbf16, #tpu.memory_space<vmem>>, %arg7: memref<1x512xf32, #tpu.memory_space<vmem>>, %arg8: memref<1x512xbf16, #tpu.memory_space<vmem>>, %arg9: memref<1x1xf32, #tpu.memory_space<vmem>>, %arg10: memref<16x1xf32, #tpu.memory_space<vmem>>) attributes {dimension_semantics = [#tpu.dimension_semantics<parallel>], iteration_bounds = array<i64: 1>, scalar_prefetch = 0 : i64, scratch_operands = 0 : i64, tpu.core_type = #tpu.core_type<tc>, window_params = [{transform_indices = @transform_0, window_bounds = array<i64: 16, 64>}, {transform_indices = @transform_1, window_bounds = array<i64: 16, 512>}, {pipeline_mode = #tpu.pipeline_mode<synchronous>, transform_indices = @transform_2, window_bounds = array<i64: 64, 512>}, {pipeline_mode = #tpu.pipeline_mode<synchronous>, transform_indices = @transform_3, window_bounds = array<i64: 512, 512>}, {pipeline_mode = #tpu.pipeline_mode<synchronous>, transform_indices = @transform_4, window_bounds = array<i64: 1, 512>}, {pipeline_mode = #tpu.pipeline_mode<synchronous>, transform_indices = @transform_5, window_bounds = array<i64: 512, 512>}, {pipeline_mode = #tpu.pipeline_mode<synchronous>, transform_indices = @transform_6, window_bounds = array<i64: 1, 512>}, {pipeline_mode = #tpu.pipeline_mode<synchronous>, transform_indices = @transform_7, window_bounds = array<i64: 1, 512>}, {pipeline_mode = #tpu.pipeline_mode<synchronous>, transform_indices = @transform_8, window_bounds = array<i64: 1, 1>}, {transform_indices = @transform_9, window_bounds = array<i64: 16, 1>}]} {
    %c0 = arith.constant 0 : index
    %c0_0 = arith.constant 0 : index
    %0 = vector.load %arg1[%c0, %c0_0] : memref<16x64xbf16, #tpu.memory_space<vmem>>, vector<16x64xbf16>
    %c0_1 = arith.constant 0 : index
    %c0_2 = arith.constant 0 : index
    %1 = vector.load %arg3[%c0_1, %c0_2] : memref<64x512xbf16, #tpu.memory_space<vmem>>, vector<64x512xbf16>
    %cst = arith.constant dense<0.000000e+00> : vector<16x512xf32>
    %2 = tpu.matmul %0, %1, %cst {dimension_numbers = #tpu.dot_dimension_numbers<[1], [0], [0], [1], [0, 0, 1, 1], [], []>} : vector<16x64xbf16>, vector<64x512xbf16>, vector<16x512xf32> -> vector<16x512xf32>
    %c0_3 = arith.constant 0 : index
    %c0_4 = arith.constant 0 : index
    %3 = vector.load %arg2[%c0_3, %c0_4] : memref<16x512xf32, #tpu.memory_space<vmem>>, vector<16x512xf32>
    %4 = arith.addf %2, %3 : vector<16x512xf32>
    %cst_5 = arith.constant 0.000000e+00 : f32
    %5 = vector.broadcast %cst_5 : f32 to vector<16x512xf32>
    %6 = arith.cmpf ogt, %4, %5 : vector<16x512xf32>
    %cst_6 = arith.constant 2.000000e-01 : f32
    %7 = vector.broadcast %cst_6 : f32 to vector<16x512xf32>
    %8 = arith.mulf %7, %4 : vector<16x512xf32>
    %9 = arith.select %6, %4, %8 : vector<16x512xi1>, vector<16x512xf32>
    %10 = arith.truncf %9 : vector<16x512xf32> to vector<16x512xbf16>
    %c0_7 = arith.constant 0 : index
    %c0_8 = arith.constant 0 : index
    %11 = vector.load %arg4[%c0_7, %c0_8] : memref<512x512xbf16, #tpu.memory_space<vmem>>, vector<512x512xbf16>
    %cst_9 = arith.constant dense<0.000000e+00> : vector<16x512xf32>
    %12 = tpu.matmul %10, %11, %cst_9 {dimension_numbers = #tpu.dot_dimension_numbers<[1], [0], [0], [1], [0, 0, 1, 1], [], []>} : vector<16x512xbf16>, vector<512x512xbf16>, vector<16x512xf32> -> vector<16x512xf32>
    %c0_10 = arith.constant 0 : index
    %c0_11 = arith.constant 0 : index
    %13 = vector.load %arg5[%c0_10, %c0_11] : memref<1x512xf32, #tpu.memory_space<vmem>>, vector<1x512xf32>
    %14 = vector.broadcast %13 : vector<1x512xf32> to vector<16x512xf32>
    %15 = arith.addf %12, %14 : vector<16x512xf32>
    %cst_12 = arith.constant 0.000000e+00 : f32
    %16 = vector.broadcast %cst_12 : f32 to vector<16x512xf32>
    %17 = arith.cmpf ogt, %15, %16 : vector<16x512xf32>
    %cst_13 = arith.constant 2.000000e-01 : f32
    %18 = vector.broadcast %cst_13 : f32 to vector<16x512xf32>
    %19 = arith.mulf %18, %15 : vector<16x512xf32>
    %20 = arith.select %17, %15, %19 : vector<16x512xi1>, vector<16x512xf32>
    %21 = arith.truncf %20 : vector<16x512xf32> to vector<16x512xbf16>
    %c0_14 = arith.constant 0 : index
    %c0_15 = arith.constant 0 : index
    %22 = vector.load %arg6[%c0_14, %c0_15] : memref<512x512xbf16, #tpu.memory_space<vmem>>, vector<512x512xbf16>
    %cst_16 = arith.constant dense<0.000000e+00> : vector<16x512xf32>
    %23 = tpu.matmul %21, %22, %cst_16 {dimension_numbers = #tpu.dot_dimension_numbers<[1], [0], [0], [1], [0, 0, 1, 1], [], []>} : vector<16x512xbf16>, vector<512x512xbf16>, vector<16x512xf32> -> vector<16x512xf32>
    %c0_17 = arith.constant 0 : index
    %c0_18 = arith.constant 0 : index
    %24 = vector.load %arg7[%c0_17, %c0_18] : memref<1x512xf32, #tpu.memory_space<vmem>>, vector<1x512xf32>
    %25 = vector.broadcast %24 : vector<1x512xf32> to vector<16x512xf32>
    %26 = arith.addf %23, %25 : vector<16x512xf32>
    %cst_19 = arith.constant 0.000000e+00 : f32
    %27 = vector.broadcast %cst_19 : f32 to vector<16x512xf32>
    %28 = arith.cmpf ogt, %26, %27 : vector<16x512xf32>
    %cst_20 = arith.constant 2.000000e-01 : f32
    %29 = vector.broadcast %cst_20 : f32 to vector<16x512xf32>
    %30 = arith.mulf %29, %26 : vector<16x512xf32>
    %31 = arith.select %28, %26, %30 : vector<16x512xi1>, vector<16x512xf32>
    %c0_21 = arith.constant 0 : index
    %c0_22 = arith.constant 0 : index
    %32 = vector.load %arg8[%c0_21, %c0_22] : memref<1x512xbf16, #tpu.memory_space<vmem>>, vector<1x512xbf16>
    %33 = arith.extf %32 : vector<1x512xbf16> to vector<1x512xf32>
    %34 = vector.broadcast %33 : vector<1x512xf32> to vector<16x512xf32>
    %35 = arith.mulf %31, %34 : vector<16x512xf32>
    %cst_23 = arith.constant dense<0.000000e+00> : vector<16xf32>
    %36 = vector.multi_reduction <add>, %35, %cst_23 [1] : vector<16x512xf32> to vector<16xf32>
    %37 = vector.shape_cast %36 : vector<16xf32> to vector<16x1xf32>
    %c0_24 = arith.constant 0 : index
    %c0_25 = arith.constant 0 : index
    %38 = vector.load %arg9[%c0_24, %c0_25] : memref<1x1xf32, #tpu.memory_space<vmem>>, vector<1x1xf32>
    %39 = vector.broadcast %38 : vector<1x1xf32> to vector<16x1xf32>
    %40 = arith.addf %37, %39 : vector<16x1xf32>
    %c0_26 = arith.constant 0 : index
    %c0_27 = arith.constant 0 : index
    %41 = vector.load %arg10[%c0_26, %c0_27] : memref<16x1xf32, #tpu.memory_space<vmem>>, vector<16x1xf32>
    tpu.vector_store %arg10[%c0_26, %c0_27], %40 {strides = array<i32>} : memref<16x1xf32, #tpu.memory_space<vmem>>, vector<16x1xf32>,
    return
  }
  func.func @transform_0(%arg0: i32) -> (i32, i32) {
    %c0_i32 = arith.constant 0 : i32
    %c0_i32_0 = arith.constant 0 : i32
    return %arg0, %c0_i32 : i32, i32
  }
  func.func @transform_1(%arg0: i32) -> (i32, i32) {
    %c0_i32 = arith.constant 0 : i32
    %c0_i32_0 = arith.constant 0 : i32
    return %arg0, %c0_i32 : i32, i32
  }
  func.func @transform_2(%arg0: i32) -> (i32, i32) {
    %c0_i32 = arith.constant 0 : i32
    %c0_i32_0 = arith.constant 0 : i32
    %c0_i32_1 = arith.constant 0 : i32
    return %c0_i32, %c0_i32_0 : i32, i32
  }
  func.func @transform_3(%arg0: i32) -> (i32, i32) {
    %c0_i32 = arith.constant 0 : i32
    %c0_i32_0 = arith.constant 0 : i32
    %c0_i32_1 = arith.constant 0 : i32
    return %c0_i32, %c0_i32_0 : i32, i32
  }
  func.func @transform_4(%arg0: i32) -> (i32, i32) {
    %c0_i32 = arith.constant 0 : i32
    %c0_i32_0 = arith.constant 0 : i32
    %c0_i32_1 = arith.constant 0 : i32
    return %c0_i32, %c0_i32_0 : i32, i32
  }
  func.func @transform_5(%arg0: i32) -> (i32, i32) {
    %c0_i32 = arith.constant 0 : i32
    %c0_i32_0 = arith.constant 0 : i32
    %c0_i32_1 = arith.constant 0 : i32
    return %c0_i32, %c0_i32_0 : i32, i32
  }
  func.func @transform_6(%arg0: i32) -> (i32, i32) {
    %c0_i32 = arith.constant 0 : i32
    %c0_i32_0 = arith.constant 0 : i32
    %c0_i32_1 = arith.constant 0 : i32
    return %c0_i32, %c0_i32_0 : i32, i32
  }
  func.func @transform_7(%arg0: i32) -> (i32, i32) {
    %c0_i32 = arith.constant 0 : i32
    %c0_i32_0 = arith.constant 0 : i32
    %c0_i32_1 = arith.constant 0 : i32
    return %c0_i32, %c0_i32_0 : i32, i32
  }
  func.func @transform_8(%arg0: i32) -> (i32, i32) {
    %c0_i32 = arith.constant 0 : i32
    %c0_i32_0 = arith.constant 0 : i32
    %c0_i32_1 = arith.constant 0 : i32
    return %c0_i32, %c0_i32_0 : i32, i32
  }
  func.func @transform_9(%arg0: i32) -> (i32, i32) {
    %c0_i32 = arith.constant 0 : i32
    %c0_i32_0 = arith.constant 0 : i32
    return %arg0, %c0_i32 : i32, i32
  }
}

</mosaic_0001>

<bundles_post_ra>
// kernel: discriminator_forward.1
= control target key start
LH: loop header
LB: loop body
LE: loop exit
PB: predicated region body
PF: predicated region fallthrough
CT: control target
= control target key end

     0   :  { %s4065_s0 = inlined_call_operand.vmem [shape: bf16[16,64], index: 0, kind: input, shape index: {}]   ;;  %s4066_s1 = inlined_call_operand.vmem [shape: f32[16,512], index: 1, kind: input, shape index: {}]   ;;  %s4067_s2 = inlined_call_operand.vmem [shape: bf16[64,512], index: 2, kind: input, shape index: {}]   ;;  %s4068_s3 = inlined_call_operand.hbm [shape: bf16[512,512], index: 3, kind: input, shape index: {}]   ;;  %s4069_s4 = inlined_call_operand.vmem [shape: f32[1,512], index: 4, kind: input, shape index: {}]   ;;  %s4070_s5 = inlined_call_operand.hbm [shape: bf16[512,512], index: 5, kind: input, shape index: {}]   ;;  %s4071_s6 = inlined_call_operand.vmem [shape: f32[1,512], index: 6, kind: input, shape index: {}]   ;;  %s4072_s7 = inlined_call_operand.vmem [shape: bf16[1,512], index: 7, kind: input, shape index: {}]   ;;  %s4073_s8 = inlined_call_operand.<no memory space> [shape: f32[1,1], index: 8, kind: input, shape index: {}]   ;;  %s4074_s9 = inlined_call_operand.vmem [shape: f32[16,1], index: 9, kind: output, shape index: {}]  }
   0x1   :  { %v14_v0 = vstv %s4073_s8 }
   0x2   :  { %15 = vst [vmem:[#allocation2] sm:$0x1] %v14_v0 }
   0x3   :  { %16 = vsyncpa [#allocation4], 0  ;;  %s28_s13 = sshll.u32 %s4068_s3, 4  ;;  %s29_s13 = int_to_ptr.hbm [resolvable:$true] %s28_s13 }
   0x4   :  { %17 = vsyncpa [#allocation6], 0  ;;  %s3796_s14 = smov [#allocation3]   ;;  %s43_s18 = sshll.u32 %s4070_s5, 4  ;;  %s44_s18 = int_to_ptr.hbm [resolvable:$true] %s43_s18 }
   0x5   :  { %s30_s15 = sshll.u32 %s3796_s14, 4  ;;  %s3797_s19 = smov 256   ;;  %s31_s15 = int_to_ptr.vmem [resolvable:$true] %s30_s15 }
   0x6   :  { %s3798_s20 = smov 16   ;;  %s3799_s8 = smov [#allocation5]  }
   0x7   :  { %36 = dma.hbm_to_vmem [thread:$0]  %s29_s13, 16384, %s31_s15, [#allocation4], %s3797_s19, %s3797_s19, %s3798_s20  }
   0x8   :  { %s45_s21 = sshll.u32 %s3799_s8, 4  ;;  %s46_s21 = int_to_ptr.vmem [resolvable:$true] %s45_s21 }
   0x9   :  { %51 = dma.hbm_to_vmem [thread:$0]  %s44_s18, 16384, %s46_s21, [#allocation6], %s3797_s19, %s3797_s19, %s3798_s20  }
   0xa   :  { %3792 = dma.done.wait [#allocation4], 16384  }
   0xb   :  { %3793 = vsyncadd [#allocation4], 4294950912 }
   0xc   :  { %3794 = dma.done.wait [#allocation6], 16384  }
   0xd   :  { %3795 = vsyncadd [#allocation6], 4294950912  ;;  %v2424_v1 = vld [vmem:[%s4067_s2 + $0x60] sm:$0xf]  ;;  %v3481_v2 = vld [vmem:[%s4067_s2 + $0x6c] sm:$0xf0] }
   0xe   :  { %v3479_v3 = vld [vmem:[%s4067_s2 + $0x64] sm:$0xf]  ;;  %v2425_v4 = vor.u32 %v3481_v2, %v2424_v1  ;;  %v2426_v5 = vld [vmem:[%s4067_s2 + $0x70] sm:$0xf0]  ;;  %v2432_v6 = vld [vmem:[%s4067_s2 + $0x68] sm:$0xf] }
   0xf   :  { %v3482_v7 = vld [vmem:[%s4067_s2 + $0x74] sm:$0xf0]  ;;  %v2429_v8 = vor.u32 %v3479_v3, %v2426_v5  ;;  %v3480_v10 = vld [vmem:[%s4067_s2 + $0x6c] sm:$0xf]  ;;  %v2434_v11 = vld [vmem:[%s4067_s2 + $0x78] sm:$0xf0] }
  0x10   :  { %v2433_v9 = vor.u32 %v3482_v7, %v2432_v6  ;;  %v2408_v12 = vld [vmem:[%s4067_s2 + $0x40] sm:$0xf]  ;;  %186 = vmatpush.bf16.msra.mxu0 %v2425_v4  ;;  %v2437_v13 = vor.u32 %v3480_v10, %v2434_v11  ;;  %v3477_v14 = vld [vmem:[%s4067_s2 + $0x4c] sm:$0xf0]  ;;  %v3475_v15 = vld [vmem:[%s4067_s2 + $0x44] sm:$0xf] }
  0x11   :  { %v2410_v16 = vld [vmem:[%s4067_s2 + $0x50] sm:$0xf0]  ;;  %200 = vmatpush.bf16.msra.mxu1 %v2429_v8  ;;  %v2409_v17 = vor.u32 %v3477_v14, %v2408_v12  ;;  %v2416_v19 = vld [vmem:[%s4067_s2 + $0x48] sm:$0xf]  ;;  %v3478_v20 = vld [vmem:[%s4067_s2 + $0x54] sm:$0xf0] }
  0x12   :  { %214 = vmatpush.bf16.msra.mxu2 %v2433_v9  ;;  %v2413_v18 = vor.u32 %v3475_v15, %v2410_v16  ;;  %v3476_v21 = vld [vmem:[%s4067_s2 + $0x4c] sm:$0xf]  ;;  %228 = vmatpush.bf16.msra.mxu3 %v2437_v13  ;;  %v2417_v22 = vor.u32 %v3478_v20, %v2416_v19  ;;  %v2418_v23 = vld [vmem:[%s4067_s2 + $0x58] sm:$0xf0]  ;;  %v2392_v24 = vld [vmem:[%s4067_s2 + $0x20] sm:$0xf] }
  0x13   :  { %v3473_v25 = vld [vmem:[%s4067_s2 + $0x2c] sm:$0xf0]  ;;  %v2421_v26 = vor.u32 %v3476_v21, %v2418_v23  ;;  %v3471_v27 = vld [vmem:[%s4067_s2 + $0x24] sm:$0xf]  ;;  %v2394_v28 = vld [vmem:[%s4067_s2 + $0x30] sm:$0xf0] }
  0x14   :  { %v2400_v29 = vld [vmem:[%s4067_s2 + $0x28] sm:$0xf]  ;;  %187 = vmatpush.bf16.msra.mxu0 %v2409_v17  ;;  %v2393_v30 = vor.u32 %v3473_v25, %v2392_v24  ;;  %v3474_v31 = vld [vmem:[%s4067_s2 + $0x34] sm:$0xf0]  ;;  %v3472_v32 = vld [vmem:[%s4067_s2 + $0x2c] sm:$0xf]  ;;  %v2397_v34 = vor.u32 %v3471_v27, %v2394_v28 }
  0x15   :  { %v2402_v33 = vld [vmem:[%s4067_s2 + $0x38] sm:$0xf0]  ;;  %201 = vmatpush.bf16.msra.mxu1 %v2413_v18  ;;  %v2401_v35 = vor.u32 %v3474_v31, %v2400_v29  ;;  %v2376_v36 = vld [vmem:[%s4067_s2] sm:$0xf]  ;;  %v3469_v37 = vld [vmem:[%s4067_s2 + $0xc] sm:$0xf0] }
  0x16   :  { %215 = vmatpush.bf16.msra.mxu2 %v2417_v22  ;;  %v3467_v38 = vld [vmem:[%s4067_s2 + $0x4] sm:$0xf]  ;;  %229 = vmatpush.bf16.msra.mxu3 %v2421_v26  ;;  %v2405_v39 = vor.u32 %v3472_v32, %v2402_v33  ;;  %v2378_v40 = vld [vmem:[%s4067_s2 + $0x10] sm:$0xf0]  ;;  %v2384_v41 = vld [vmem:[%s4067_s2 + $0x8] sm:$0xf]  ;;  %v2377_v45 = vor.u32 %v3469_v37, %v2376_v36 }
  0x17   :  { %v3470_v42 = vld [vmem:[%s4067_s2 + $0x14] sm:$0xf0]  ;;  %v3468_v43 = vld [vmem:[%s4067_s2 + $0xc] sm:$0xf]  ;;  %v2386_v44 = vld [vmem:[%s4067_s2 + $0x18] sm:$0xf0]  ;;  %v2381_v49 = vor.u32 %v3467_v38, %v2378_v40 }
  0x18   :  { %188 = vmatpush.bf16.msra.mxu0 %v2393_v30  ;;  %v2556_v46 = vld [vmem:[#allocation3 + $0xe0] sm:$0xf]  ;;  %v3513_v47 = vld [vmem:[#allocation3 + $0xec] sm:$0xf0]  ;;  %v2385_v50 = vor.u32 %v3470_v42, %v2384_v41  ;;  %v2389_v53 = vor.u32 %v3468_v43, %v2386_v44  ;;  %vm178_vm0 = vcmask 523264  }
  0x19   :  { %v2684_v48 = vld [vmem:[#allocation3 + $0x1e0] sm:$0xf]  ;;  %202 = vmatpush.bf16.msra.mxu1 %v2397_v34  ;;  %v3545_v52 = vld [vmem:[#allocation3 + $0x1ec] sm:$0xf0]  ;;  %v2557_v54 = vor.u32 %v3513_v47, %v2556_v46 }
  0x1a   :  { %216 = vmatpush.bf16.msra.mxu2 %v2401_v35  ;;  %v3466_v51 = vld [vmem:[%s4065_s0] sm:$0xff]  ;;  %230 = vmatpush.bf16.msra.mxu3 %v2405_v39  ;;  %v3509_v56 = vld [vmem:[#allocation3 + $0xcc] sm:$0xf0]  ;;  %v2685_v58 = vor.u32 %v3545_v52, %v2684_v48 }
  0x1b   :  { %v2540_v55 = vld [vmem:[#allocation3 + $0xc0] sm:$0xf]  ;;  %v3577_v59 = vld [vmem:[#allocation3 + $0x2ec] sm:$0xf0] }
  0x1c   :  { %v2812_v57 = vld [vmem:[#allocation3 + $0x2e0] sm:$0xf]  ;;  %v3609_v61 = vld [vmem:[#allocation3 + $0x3ec] sm:$0xf0]  ;;  %189 = vmatpush.bf16.msra.mxu0 %v2377_v45  ;;  %v2541_v1 = vor.u32 %v3509_v56, %v2540_v55 }
  0x1d   :  { %v2940_v60 = vld [vmem:[#allocation3 + $0x3e0] sm:$0xf]  ;;  %v3541_v63 = vld [vmem:[#allocation3 + $0x1cc] sm:$0xf0]  ;;  %203 = vmatpush.bf16.msra.mxu1 %v2381_v49  ;;  %v2813_v0 = vor.u32 %v3577_v59, %v2812_v57 }
  0x1e   :  { %v2668_v62 = vld [vmem:[#allocation3 + $0x1c0] sm:$0xf]  ;;  %217 = vmatpush.bf16.msra.mxu2 %v2385_v50  ;;  %231 = vmatpush.bf16.msra.mxu3 %v2389_v53  ;;  %v2941_v2 = vor.u32 %v3609_v61, %v2940_v60  ;;  %v3573_v5 = vld [vmem:[#allocation3 + $0x2cc] sm:$0xf0] }
  0x1f   :  { %v2524_v3 = vld [vmem:[#allocation3 + $0xa0] sm:$0xf]  ;;  %2438 = vmatmul.msk.bf16.vlgmr.msra.gmra.mxu0 %vm178_vm0, %v3466_v51  ;;  %v2669_v6 = vor.u32 %v3541_v63, %v2668_v62  ;;  %v3505_v7 = vld [vmem:[#allocation3 + $0xac] sm:$0xf0] }
  0x20   :  { %1044 = vmatpush.bf16.msrb.mxu0 %v2557_v54  ;;  %v2796_v4 = vld [vmem:[#allocation3 + $0x2c0] sm:$0xf]  ;;  %v3605_v9 = vld [vmem:[#allocation3 + $0x3cc] sm:$0xf0]  ;;  %2439 = vmatmul.msk.bf16.vlgmr.msra.gmra.mxu1 %vm178_vm0, %v3466_v51  ;;  %v2525_v13 = vor.u32 %v3505_v7, %v2524_v3 }
  0x21   :  { %1058 = vmatpush.bf16.msrb.mxu1 %v2685_v58  ;;  %v2924_v8 = vld [vmem:[#allocation3 + $0x3c0] sm:$0xf]  ;;  %2440 = vmatmul.msk.bf16.vlgmr.msra.gmra.mxu2 %vm178_vm0, %v3466_v51  ;;  %v3537_v11 = vld [vmem:[#allocation3 + $0x1ac] sm:$0xf0]  ;;  %v2797_v12 = vor.u32 %v3573_v5, %v2796_v4 }
  0x22   :  { %v2652_v10 = vld [vmem:[#allocation3 + $0x1a0] sm:$0xf]  ;;  %2441 = vmatmul.msk.bf16.vlgmr.msra.gmra.mxu3 %vm178_vm0, %v3466_v51  ;;  %1072 = vmatpush.bf16.msrb.mxu2 %v2813_v0  ;;  %v2925_v14 = vor.u32 %v3605_v9, %v2924_v8  ;;  %v3569_v17 = vld [vmem:[#allocation3 + $0x2ac] sm:$0xf0]  ;;  %v3511_v8 = vld [vmem:[#allocation3 + $0xe4] sm:$0xf] }
  0x23   :  { %1086 = vmatpush.bf16.msrb.mxu3 %v2941_v2  ;;  %v2508_v15 = vld [vmem:[#allocation3 + $0x80] sm:$0xf]  ;;  %v2653_v18 = vor.u32 %v3537_v11, %v2652_v10  ;;  %v3501_v19 = vld [vmem:[#allocation3 + $0x8c] sm:$0xf0]  ;;  %v2558_v9 = vld [vmem:[#allocation3 + $0xf0] sm:$0xf0] }
  0x24   :  { %1045 = vmatpush.bf16.msrb.mxu0 %v2541_v1  ;;  %v2780_v16 = vld [vmem:[#allocation3 + $0x2a0] sm:$0xf]  ;;  %v3601_v21 = vld [vmem:[#allocation3 + $0x3ac] sm:$0xf0]  ;;  %v2509_v25 = vor.u32 %v3501_v19, %v2508_v15  ;;  %v3543_v10 = vld [vmem:[#allocation3 + $0x1e4] sm:$0xf] }
  0x25   :  { %1059 = vmatpush.bf16.msrb.mxu1 %v2669_v6  ;;  %v2908_v20 = vld [vmem:[#allocation3 + $0x3a0] sm:$0xf]  ;;  %v3533_v23 = vld [vmem:[#allocation3 + $0x18c] sm:$0xf0]  ;;  %v2781_v24 = vor.u32 %v3569_v17, %v2780_v16  ;;  %v2686_v11 = vld [vmem:[#allocation3 + $0x1f0] sm:$0xf0] }
  0x26   :  { %v2636_v22 = vld [vmem:[#allocation3 + $0x180] sm:$0xf]  ;;  %1073 = vmatpush.bf16.msrb.mxu2 %v2797_v12  ;;  %v2909_v26 = vor.u32 %v3601_v21, %v2908_v20  ;;  %v3565_v29 = vld [vmem:[#allocation3 + $0x28c] sm:$0xf0]  ;;  %v3507_v15 = vld [vmem:[#allocation3 + $0xc4] sm:$0xf]  ;;  %v2561_v20 = vor.u32 %v3511_v8, %v2558_v9 }
  0x27   :  { %1087 = vmatpush.bf16.msrb.mxu3 %v2925_v14  ;;  %v2492_v27 = vld [vmem:[#allocation3 + $0x60] sm:$0xf]  ;;  %v2637_v30 = vor.u32 %v3533_v23, %v2636_v22  ;;  %v3497_v31 = vld [vmem:[#allocation3 + $0x6c] sm:$0xf0]  ;;  %v3575_v22 = vld [vmem:[#allocation3 + $0x2e4] sm:$0xf] }
  0x28   :  { %1046 = vmatpush.bf16.msrb.mxu0 %v2525_v13  ;;  %v2764_v28 = vld [vmem:[#allocation3 + $0x280] sm:$0xf]  ;;  %v3597_v33 = vld [vmem:[#allocation3 + $0x38c] sm:$0xf0]  ;;  %v2493_v37 = vor.u32 %v3497_v31, %v2492_v27  ;;  %v2814_v23 = vld [vmem:[#allocation3 + $0x2f0] sm:$0xf0] }
  0x29   :  { %1060 = vmatpush.bf16.msrb.mxu1 %v2653_v18  ;;  %v2892_v32 = vld [vmem:[#allocation3 + $0x380] sm:$0xf]  ;;  %v3529_v35 = vld [vmem:[#allocation3 + $0x16c] sm:$0xf0]  ;;  %v2765_v36 = vor.u32 %v3565_v29, %v2764_v28  ;;  %v2942_v27 = vld [vmem:[#allocation3 + $0x3f0] sm:$0xf0] }
  0x2a   :  { %v2620_v34 = vld [vmem:[#allocation3 + $0x160] sm:$0xf]  ;;  %1074 = vmatpush.bf16.msrb.mxu2 %v2781_v24  ;;  %v2893_v38 = vor.u32 %v3597_v33, %v2892_v32  ;;  %v3561_v41 = vld [vmem:[#allocation3 + $0x26c] sm:$0xf0]  ;;  %v2689_v24 = vor.u32 %v3543_v10, %v2686_v11  ;;  %v3539_v28 = vld [vmem:[#allocation3 + $0x1c4] sm:$0xf]  ;;  %v2817_v32 = vor.u32 %v3575_v22, %v2814_v23 }
  0x2b   :  { %1088 = vmatpush.bf16.msrb.mxu3 %v2909_v26  ;;  %v2476_v39 = vld [vmem:[#allocation3 + $0x40] sm:$0xf]  ;;  %v2621_v42 = vor.u32 %v3529_v35, %v2620_v34  ;;  %v3493_v43 = vld [vmem:[#allocation3 + $0x4c] sm:$0xf0]  ;;  %v3607_v26 = vld [vmem:[#allocation3 + $0x3e4] sm:$0xf] }
  0x2c   :  { %1047 = vmatpush.bf16.msrb.mxu0 %v2509_v25  ;;  %v2748_v40 = vld [vmem:[#allocation3 + $0x260] sm:$0xf]  ;;  %v3593_v45 = vld [vmem:[#allocation3 + $0x36c] sm:$0xf0]  ;;  %v2477_v49 = vor.u32 %v3493_v43, %v2476_v39  ;;  %v2542_v25 = vld [vmem:[#allocation3 + $0xd0] sm:$0xf0]  ;;  %v2945_v34 = vor.u32 %v3607_v26, %v2942_v27 }
  0x2d   :  { %1061 = vmatpush.bf16.msrb.mxu1 %v2637_v30  ;;  %v2876_v44 = vld [vmem:[#allocation3 + $0x360] sm:$0xf]  ;;  %v3525_v47 = vld [vmem:[#allocation3 + $0x14c] sm:$0xf0]  ;;  %v2749_v48 = vor.u32 %v3561_v41, %v2748_v40  ;;  %v2670_v29 = vld [vmem:[#allocation3 + $0x1d0] sm:$0xf0]  ;;  %v2545_v33 = vor.u32 %v3507_v15, %v2542_v25 }
  0x2e   :  { %v2604_v46 = vld [vmem:[#allocation3 + $0x140] sm:$0xf]  ;;  %1075 = vmatpush.bf16.msrb.mxu2 %v2765_v36  ;;  %v2877_v50 = vor.u32 %v3593_v45, %v2876_v44  ;;  %v3557_v53 = vld [vmem:[#allocation3 + $0x24c] sm:$0xf0]  ;;  %v3503_v35 = vld [vmem:[#allocation3 + $0xa4] sm:$0xf] }
  0x2f   :  { %1089 = vmatpush.bf16.msrb.mxu3 %v2893_v38  ;;  %v2460_v51 = vld [vmem:[#allocation3 + $0x20] sm:$0xf]  ;;  %v2605_v54 = vor.u32 %v3525_v47, %v2604_v46  ;;  %v3489_v55 = vld [vmem:[#allocation3 + $0x2c] sm:$0xf0]  ;;  %v3571_v36 = vld [vmem:[#allocation3 + $0x2c4] sm:$0xf]  ;;  %v2673_v38 = vor.u32 %v3539_v28, %v2670_v29 }
  0x30   :  { %1048 = vmatpush.bf16.msrb.mxu0 %v2493_v37  ;;  %v2732_v52 = vld [vmem:[#allocation3 + $0x240] sm:$0xf]  ;;  %v3589_v57 = vld [vmem:[#allocation3 + $0x34c] sm:$0xf0]  ;;  %v2461_v62 = vor.u32 %v3489_v55, %v2460_v51  ;;  %v2798_v37 = vld [vmem:[#allocation3 + $0x2d0] sm:$0xf0] }
  0x31   :  { %1062 = vmatpush.bf16.msrb.mxu1 %v2621_v42  ;;  %v2860_v56 = vld [vmem:[#allocation3 + $0x340] sm:$0xf]  ;;  %v3521_v59 = vld [vmem:[#allocation3 + $0x12c] sm:$0xf0]  ;;  %v2733_v60 = vor.u32 %v3557_v53, %v2732_v52  ;;  %v2526_v39 = vld [vmem:[#allocation3 + $0xb0] sm:$0xf0]  ;;  %v2801_v44 = vor.u32 %v3571_v36, %v2798_v37 }
  0x32   :  { %v2588_v58 = vld [vmem:[#allocation3 + $0x120] sm:$0xf]  ;;  %1076 = vmatpush.bf16.msrb.mxu2 %v2749_v48  ;;  %v2861_v63 = vor.u32 %v3589_v57, %v2860_v56  ;;  %v3485_v0 = vld [vmem:[#allocation3 + $0xc] sm:$0xf0]  ;;  %v3603_v40 = vld [vmem:[#allocation3 + $0x3c4] sm:$0xf]  ;;  %v2529_v45 = vor.u32 %v3503_v35, %v2526_v39 }
  0x33   :  { %v2444_v61 = vld [vmem:[#allocation3] sm:$0xf]  ;;  %1090 = vmatpush.bf16.msrb.mxu3 %v2877_v50  ;;  %v3553_v2 = vld [vmem:[#allocation3 + $0x22c] sm:$0xf0]  ;;  %v2589_v3 = vor.u32 %v3521_v59, %v2588_v58  ;;  %v2926_v41 = vld [vmem:[#allocation3 + $0x3d0] sm:$0xf0] }
  0x34   :  { %1049 = vmatpush.bf16.msrb.mxu0 %v2477_v49  ;;  %v2716_v1 = vld [vmem:[#allocation3 + $0x220] sm:$0xf]  ;;  %v3585_v6 = vld [vmem:[#allocation3 + $0x32c] sm:$0xf0]  ;;  %v2445_v13 = vor.u32 %v3485_v0, %v2444_v61  ;;  %v3535_v42 = vld [vmem:[#allocation3 + $0x1a4] sm:$0xf]  ;;  %v2929_v46 = vor.u32 %v3603_v40, %v2926_v41 }
  0x35   :  { %1063 = vmatpush.bf16.msrb.mxu1 %v2605_v54  ;;  %v2572_v4 = vld [vmem:[#allocation3 + $0x100] sm:$0xf]  ;;  %v3517_v7 = vld [vmem:[#allocation3 + $0x10c] sm:$0xf0]  ;;  %v2717_v12 = vor.u32 %v3553_v2, %v2716_v1  ;;  %v2654_v43 = vld [vmem:[#allocation3 + $0x1b0] sm:$0xf0] }
  0x36   :  { %v2844_v5 = vld [vmem:[#allocation3 + $0x320] sm:$0xf]  ;;  %1077 = vmatpush.bf16.msrb.mxu2 %v2733_v60  ;;  %v3549_v17 = vld [vmem:[#allocation3 + $0x20c] sm:$0xf0]  ;;  %v2573_v19 = vor.u32 %v3517_v7, %v2572_v4  ;;  %v2657_v47 = vor.u32 %v3535_v42, %v2654_v43  ;;  %v3499_v48 = vld [vmem:[#allocation3 + $0x84] sm:$0xf] }
  0x37   :  { %1091 = vmatpush.bf16.msrb.mxu3 %v2861_v63  ;;  %v2845_v14 = vor.u32 %v3585_v6, %v2844_v5  ;;  %v2700_v16 = vld [vmem:[#allocation3 + $0x200] sm:$0xf]  ;;  %v3581_v21 = vld [vmem:[#allocation3 + $0x30c] sm:$0xf0]  ;;  %v2510_v49 = vld [vmem:[#allocation3 + $0x90] sm:$0xf0] }
  0x38   :  { %1050 = vmatpush.bf16.msrb.mxu0 %v2461_v62  ;;  %v2828_v18 = vld [vmem:[#allocation3 + $0x300] sm:$0xf]  ;;  %v2701_v30 = vor.u32 %v3549_v17, %v2700_v16  ;;  %v3531_v50 = vld [vmem:[#allocation3 + $0x184] sm:$0xf]  ;;  %v2638_v51 = vld [vmem:[#allocation3 + $0x190] sm:$0xf0]  ;;  %v2513_v52 = vor.u32 %v3499_v48, %v2510_v49 }
  0x39   :  { %1064 = vmatpush.bf16.msrb.mxu1 %v2589_v3  ;;  %v2829_v31 = vor.u32 %v3581_v21, %v2828_v18  ;;  %v2641_v53 = vor.u32 %v3531_v50, %v2638_v51  ;;  %v3567_v54 = vld [vmem:[#allocation3 + $0x2a4] sm:$0xf]  ;;  %v2782_v55 = vld [vmem:[#allocation3 + $0x2b0] sm:$0xf0] }
  0x3a   :  { %1078 = vmatpush.bf16.msrb.mxu2 %v2717_v12  ;;  %v3599_v56 = vld [vmem:[#allocation3 + $0x3a4] sm:$0xf]  ;;  %v2785_v57 = vor.u32 %v3567_v54, %v2782_v55  ;;  %v2910_v58 = vld [vmem:[#allocation3 + $0x3b0] sm:$0xf0] }
  0x3b   :  { %1092 = vmatpush.bf16.msrb.mxu3 %v2845_v14  ;;  %v2913_v59 = vor.u32 %v3599_v56, %v2910_v58  ;;  %v3495_v60 = vld [vmem:[#allocation3 + $0x64] sm:$0xf]  ;;  %v2494_v61 = vld [vmem:[#allocation3 + $0x70] sm:$0xf0] }
  0x3c   :  { %1051 = vmatpush.bf16.msrb.mxu0 %v2445_v13  ;;  %v3527_v62 = vld [vmem:[#allocation3 + $0x164] sm:$0xf]  ;;  %v2497_v63 = vor.u32 %v3495_v60, %v2494_v61  ;;  %v2622_v0 = vld [vmem:[#allocation3 + $0x170] sm:$0xf0] }
  0x3d   :  { %1065 = vmatpush.bf16.msrb.mxu1 %v2573_v19  ;;  %v2625_v1 = vor.u32 %v3527_v62, %v2622_v0  ;;  %v3563_v2 = vld [vmem:[#allocation3 + $0x284] sm:$0xf]  ;;  %v2766_v3 = vld [vmem:[#allocation3 + $0x290] sm:$0xf0] }
  0x3e   :  { %1079 = vmatpush.bf16.msrb.mxu2 %v2701_v30  ;;  %v3595_v4 = vld [vmem:[#allocation3 + $0x384] sm:$0xf]  ;;  %v2769_v5 = vor.u32 %v3563_v2, %v2766_v3  ;;  %v2894_v6 = vld [vmem:[#allocation3 + $0x390] sm:$0xf0]  ;;  %v2564_v2 = vld [vmem:[#allocation3 + $0xe8] sm:$0xf] }
  0x3f   :  { %1093 = vmatpush.bf16.msrb.mxu3 %v2829_v31  ;;  %v2897_v7 = vor.u32 %v3595_v4, %v2894_v6  ;;  %v3491_v8 = vld [vmem:[#allocation3 + $0x44] sm:$0xf]  ;;  %v2478_v9 = vld [vmem:[#allocation3 + $0x50] sm:$0xf0]  ;;  %v2692_v6 = vld [vmem:[#allocation3 + $0x1e8] sm:$0xf] }
  0x40   :  { %1100 = vmatpush.bf16.msra.mxu0 %v2561_v20  ;;  %v2481_v10 = vor.u32 %v3491_v8, %v2478_v9  ;;  %v3523_v11 = vld [vmem:[#allocation3 + $0x144] sm:$0xf]  ;;  %v2606_v12 = vld [vmem:[#allocation3 + $0x150] sm:$0xf0]  ;;  %v3546_v8 = vld [vmem:[#allocation3 + $0x1f4] sm:$0xf0] }
  0x41   :  { %1114 = vmatpush.bf16.msra.mxu1 %v2689_v24  ;;  %v2609_v13 = vor.u32 %v3523_v11, %v2606_v12  ;;  %v3559_v14 = vld [vmem:[#allocation3 + $0x264] sm:$0xf]  ;;  %v2750_v15 = vld [vmem:[#allocation3 + $0x270] sm:$0xf0] }
  0x42   :  { %1128 = vmatpush.bf16.msra.mxu2 %v2817_v32  ;;  %v2753_v16 = vor.u32 %v3559_v14, %v2750_v15  ;;  %v3591_v17 = vld [vmem:[#allocation3 + $0x364] sm:$0xf]  ;;  %v2878_v18 = vld [vmem:[#allocation3 + $0x370] sm:$0xf0] }
  0x43   :  { %1142 = vmatpush.bf16.msra.mxu3 %v2945_v34  ;;  %v2881_v19 = vor.u32 %v3591_v17, %v2878_v18  ;;  %v3487_v20 = vld [vmem:[#allocation3 + $0x24] sm:$0xf]  ;;  %v2462_v21 = vld [vmem:[#allocation3 + $0x30] sm:$0xf0]  ;;  %v2548_v18 = vld [vmem:[#allocation3 + $0xc8] sm:$0xf] }
  0x44   :  { %1101 = vmatpush.bf16.msra.mxu0 %v2545_v33  ;;  %v3519_v22 = vld [vmem:[#allocation3 + $0x124] sm:$0xf]  ;;  %v2590_v23 = vld [vmem:[#allocation3 + $0x130] sm:$0xf0]  ;;  %v2465_v24 = vor.u32 %v3487_v20, %v2462_v21  ;;  %v2693_v21 = vor.u32 %v3546_v8, %v2692_v6  ;;  %v2500_v6 = vld [vmem:[#allocation3 + $0x68] sm:$0xf] }
  0x45   :  { %1115 = vmatpush.bf16.msra.mxu1 %v2673_v38  ;;  %v2593_v25 = vor.u32 %v3519_v22, %v2590_v23  ;;  %v3555_v26 = vld [vmem:[#allocation3 + $0x244] sm:$0xf]  ;;  %v2734_v27 = vld [vmem:[#allocation3 + $0x250] sm:$0xf0]  ;;  %v3510_v22 = vld [vmem:[#allocation3 + $0xd4] sm:$0xf0] }
  0x46   :  { %1129 = vmatpush.bf16.msra.mxu2 %v2801_v44  ;;  %v3587_v28 = vld [vmem:[#allocation3 + $0x344] sm:$0xf]  ;;  %v2737_v29 = vor.u32 %v3555_v26, %v2734_v27  ;;  %v2862_v30 = vld [vmem:[#allocation3 + $0x350] sm:$0xf0]  ;;  %v2676_v23 = vld [vmem:[#allocation3 + $0x1c8] sm:$0xf] }
  0x47   :  { %1143 = vmatpush.bf16.msra.mxu3 %v2929_v46  ;;  %v2865_v31 = vor.u32 %v3587_v28, %v2862_v30  ;;  %v3483_v32 = vld [vmem:[#allocation3 + $0x4] sm:$0xf]  ;;  %v2446_v33 = vld [vmem:[#allocation3 + $0x10] sm:$0xf0]  ;;  %v2820_v27 = vld [vmem:[#allocation3 + $0x2e8] sm:$0xf] }
  0x48   :  { %1102 = vmatpush.bf16.msra.mxu0 %v2529_v45  ;;  %v3515_v34 = vld [vmem:[#allocation3 + $0x104] sm:$0xf]  ;;  %v2449_v35 = vor.u32 %v3483_v32, %v2446_v33  ;;  %v2574_v36 = vld [vmem:[#allocation3 + $0x110] sm:$0xf0]  ;;  %v3578_v28 = vld [vmem:[#allocation3 + $0x2f4] sm:$0xf0] }
  0x49   :  { %1116 = vmatpush.bf16.msra.mxu1 %v2657_v47  ;;  %v2577_v37 = vor.u32 %v3515_v34, %v2574_v36  ;;  %v3551_v38 = vld [vmem:[#allocation3 + $0x224] sm:$0xf]  ;;  %v2718_v39 = vld [vmem:[#allocation3 + $0x230] sm:$0xf0]  ;;  %v3610_v33 = vld [vmem:[#allocation3 + $0x3f4] sm:$0xf0] }
  0x4a   :  { %1130 = vmatpush.bf16.msra.mxu2 %v2785_v57  ;;  %v2721_v40 = vor.u32 %v3551_v38, %v2718_v39  ;;  %v3583_v41 = vld [vmem:[#allocation3 + $0x324] sm:$0xf]  ;;  %v2846_v42 = vld [vmem:[#allocation3 + $0x330] sm:$0xf0]  ;;  %v2532_v34 = vld [vmem:[#allocation3 + $0xa8] sm:$0xf] }
  0x4b   :  { %1144 = vmatpush.bf16.msra.mxu3 %v2913_v59  ;;  %v2849_v43 = vor.u32 %v3583_v41, %v2846_v42  ;;  %v3547_v44 = vld [vmem:[#allocation3 + $0x204] sm:$0xf]  ;;  %v2702_v45 = vld [vmem:[#allocation3 + $0x210] sm:$0xf0]  ;;  %v3506_v38 = vld [vmem:[#allocation3 + $0xb4] sm:$0xf0] }
  0x4c   :  { %1103 = vmatpush.bf16.msra.mxu0 %v2513_v52  ;;  %v2705_v46 = vor.u32 %v3547_v44, %v2702_v45  ;;  %v3579_v47 = vld [vmem:[#allocation3 + $0x304] sm:$0xf]  ;;  %v2830_v48 = vld [vmem:[#allocation3 + $0x310] sm:$0xf0]  ;;  %v2660_v41 = vld [vmem:[#allocation3 + $0x1a8] sm:$0xf] }
  0x4d   :  { %1117 = vmatpush.bf16.msra.mxu1 %v2641_v53  ;;  %v2833_v49 = vor.u32 %v3579_v47, %v2830_v48  ;;  %v86_v51 = vld [vmem:[%s4066_s1 + $0x8] sm:$0xff]  ;;  %v85_v53 = vld [vmem:[%s4066_s1] sm:$0xff]  ;;  %v88_v3 = vld [vmem:[%s4066_s1 + $0x18] sm:$0xff] }
  0x4e   :  { %1131 = vmatpush.bf16.msra.mxu2 %v2769_v5  ;;  %v89_v56 = vld [vmem:[%s4066_s1 + $0x20] sm:$0xff]  ;;  %v90_v58 = vld [vmem:[%s4066_s1 + $0x28] sm:$0xff]  ;;  %v3514_v5 = vld [vmem:[#allocation3 + $0xf4] sm:$0xf0] }
  0x4f   :  { %1145 = vmatpush.bf16.msra.mxu3 %v2897_v7  ;;  %v91_v15 = vld [vmem:[%s4066_s1 + $0x30] sm:$0xff]  ;;  %v2565_v17 = vor.u32 %v3514_v5, %v2564_v2  ;;  %v3570_v2 = vld [vmem:[#allocation3 + $0x2b4] sm:$0xf0]  ;;  %v2628_v8 = vld [vmem:[#allocation3 + $0x168] sm:$0xf] }
  0x50   :  { %1104 = vmatpush.bf16.msra.mxu0 %v2497_v63  ;;  %v87_v63 = vld [vmem:[%s4066_s1 + $0x10] sm:$0xff]  ;;  %v3602_v5 = vld [vmem:[#allocation3 + $0x3b4] sm:$0xf0] }
  0x51   :  { %1118 = vmatpush.bf16.msra.mxu1 %v2625_v1 }
  0x52   :  { %1132 = vmatpush.bf16.msra.mxu2 %v2753_v16  ;;  %v92_v16 = vld [vmem:[%s4066_s1 + $0x38] sm:$0xff] }
  0x53   :  { %1146 = vmatpush.bf16.msra.mxu3 %v2881_v19 }
  0x54   :  { %1105 = vmatpush.bf16.msra.mxu0 %v2481_v10 }
  0x55   :  { %1119 = vmatpush.bf16.msra.mxu1 %v2609_v13 }
  0x56   :  { %1133 = vmatpush.bf16.msra.mxu2 %v2737_v29  ;;  %v2948_v29 = vld [vmem:[#allocation3 + $0x3e8] sm:$0xf] }
  0x57   :  { %1147 = vmatpush.bf16.msra.mxu3 %v2865_v31  ;;  %v2949_v47 = vor.u32 %v3610_v33, %v2948_v29  ;;  %v3490_v33 = vld [vmem:[#allocation3 + $0x34] sm:$0xf0] }
  0x58   :  { %1106 = vmatpush.bf16.msra.mxu0 %v2465_v24  ;;  %v3542_v24 = vld [vmem:[#allocation3 + $0x1d4] sm:$0xf0] }
  0x59   :  { %1120 = vmatpush.bf16.msra.mxu1 %v2593_v25 }
  0x5a   :  { %1134 = vmatpush.bf16.msra.mxu2 %v2721_v40  ;;  %v2677_v40 = vor.u32 %v3542_v24, %v2676_v23 }
  0x5b   :  { %1148 = vmatpush.bf16.msra.mxu3 %v2849_v43  ;;  %v3538_v43 = vld [vmem:[#allocation3 + $0x1b4] sm:$0xf0] }
  0x5c   :  { %1107 = vmatpush.bf16.msra.mxu0 %v2449_v35 }
  0x5d   :  { %1121 = vmatpush.bf16.msra.mxu1 %v2577_v37  ;;  %v2549_v37 = vor.u32 %v3510_v22, %v2548_v18  ;;  %v2484_v18 = vld [vmem:[#allocation3 + $0x48] sm:$0xf]  ;;  %v3526_v22 = vld [vmem:[#allocation3 + $0x154] sm:$0xf0] }
  0x5e   :  { %1135 = vmatpush.bf16.msra.mxu2 %v2705_v46  ;;  %v2821_v46 = vor.u32 %v3578_v28, %v2820_v27  ;;  %v3562_v27 = vld [vmem:[#allocation3 + $0x274] sm:$0xf0] }
  0x5f   :  { %1149 = vmatpush.bf16.msra.mxu3 %v2833_v49 }
  0x9c   :  { %v191_v50 = vpop.f32.mrf.mxu0 }
  0x9d   :  { %v205_v52 = vpop.f32.mrf.mxu1  ;;  %v192_v55 = vadd.f32 %v191_v50, %v85_v53  ;;  %v3574_v53 = vld [vmem:[#allocation3 + $0x2d4] sm:$0xf0] }
  0x9e   :  { %v206_v54 = vadd.f32 %v205_v52, %v86_v51  ;;  %v2533_v51 = vor.u32 %v3506_v38, %v2532_v34  ;;  %v2804_v52 = vld [vmem:[#allocation3 + $0x2c8] sm:$0xf] }
  0x9f   :  { %v246_v62 = vmul.f32 0.2, %v192_v55  ;;  %vm238_vm2 = vcmp.gt.f32.partialorder %v192_v55, 0.0  ;;  %v2596_v34 = vld [vmem:[#allocation3 + $0x128] sm:$0xf] }
  0xa0   :  { %v247_v59 = vmul.f32 0.2, %v206_v54  ;;  %vm239_vm1 = vcmp.gt.f32.partialorder %v206_v54, 0.0  ;;  %v2740_v38 = vld [vmem:[#allocation3 + $0x248] sm:$0xf] }
  0xa1   :  { %v254_v12 = vsel %vm238_vm2, %v192_v55, %v246_v62  ;;  %v2805_v62 = vor.u32 %v3574_v53, %v2804_v52  ;;  %v3544_v52 = vld [vmem:[#allocation3 + $0x1ec] sm:$0xf]  ;;  %v2694_v53 = vld [vmem:[#allocation3 + $0x1f8] sm:$0xf0] }
  0xa2   :  { %v255_v9 = vsel %vm239_vm1, %v206_v54, %v247_v59  ;;  %v2932_v54 = vld [vmem:[#allocation3 + $0x3c8] sm:$0xf]  ;;  %v3502_v59 = vld [vmem:[#allocation3 + $0x94] sm:$0xf0] }
  0xa4   :  { %v219_v57 = vpop.f32.mrf.mxu2  ;;  %v193_v61 = vpop.f32.mrf.mxu0 }
  0xa5   :  { %v233_v60 = vpop.f32.mrf.mxu3  ;;  %v194_v0 = vadd.f32 %v193_v61, %v89_v56  ;;  %v207_v1 = vpop.f32.mrf.mxu1  ;;  %v220_v10 = vadd.f32 %v219_v57, %v87_v63  ;;  %v2661_v56 = vor.u32 %v3538_v43, %v2660_v41  ;;  %v3606_v57 = vld [vmem:[#allocation3 + $0x3d4] sm:$0xf0] }
  0xa6   :  { %v208_v4 = vadd.f32 %v207_v1, %v90_v58  ;;  %v234_v13 = vadd.f32 %v233_v60, %v88_v3  ;;  %v2516_v58 = vld [vmem:[#allocation3 + $0x88] sm:$0xf]  ;;  %v3534_v61 = vld [vmem:[#allocation3 + $0x194] sm:$0xf0]  ;;  %v2933_v63 = vor.u32 %v3606_v57, %v2932_v54 }
  0xa7   :  { %vm242_vm3 = vcmp.gt.f32.partialorder %v194_v0, 0.0  ;;  %v250_v7 = vmul.f32 0.2, %v194_v0  ;;  %v248_v30 = vmul.f32 0.2, %v220_v10  ;;  %vm240_vm5 = vcmp.gt.f32.partialorder %v220_v10, 0.0 }
  0xa8   :  { %vm243_vm4 = vcmp.gt.f32.partialorder %v208_v4, 0.0  ;;  %v251_v11 = vmul.f32 0.2, %v208_v4  ;;  %v249_v35 = vmul.f32 0.2, %v234_v13  ;;  %vm241_vm6 = vcmp.gt.f32.partialorder %v234_v13, 0.0 }
  0xa9   :  { %v258_v14 = vsel %vm242_vm3, %v194_v0, %v250_v7  ;;  %v256_v44 = vsel %vm240_vm5, %v220_v10, %v248_v30  ;;  %v2644_v60 = vld [vmem:[#allocation3 + $0x188] sm:$0xf]  ;;  %v2517_v0 = vor.u32 %v3502_v59, %v2516_v58  ;;  %v3498_v7 = vld [vmem:[#allocation3 + $0x74] sm:$0xf0] }
  0xaa   :  { %v3986_v19 = vpack.c.bf16 %v258_v14, %v254_v12  ;;  %v259_v20 = vsel %vm243_vm4, %v208_v4, %v251_v11  ;;  %v257_v48 = vsel %vm241_vm6, %v234_v13, %v249_v35  ;;  %v2788_v1 = vld [vmem:[#allocation3 + $0x2a8] sm:$0xf]  ;;  %v2645_v3 = vor.u32 %v3534_v61, %v2644_v60  ;;  %v3566_v13 = vld [vmem:[#allocation3 + $0x294] sm:$0xf0] }
  0xab   :  { %v3988_v25 = vpack.c.bf16 %v259_v20, %v255_v9  ;;  %v2916_v4 = vld [vmem:[#allocation3 + $0x3a8] sm:$0xf]  ;;  %v3530_v9 = vld [vmem:[#allocation3 + $0x174] sm:$0xf0]  ;;  %v2789_v10 = vor.u32 %v3570_v2, %v2788_v1  ;;  %v2501_v14 = vor.u32 %v3498_v7, %v2500_v6  ;;  %v2550_v2 = vld [vmem:[#allocation3 + $0xd8] sm:$0xf0] }
  0xac   :  { %v221_v26 = vpop.f32.mrf.mxu2  ;;  %1052 = vmatmul.bf16.vlgmr.msrb.gmra.mxu0 %v3986_v19  ;;  %v2917_v11 = vor.u32 %v3602_v5, %v2916_v4  ;;  %v2772_v12 = vld [vmem:[#allocation3 + $0x288] sm:$0xf]  ;;  %v3494_v20 = vld [vmem:[#allocation3 + $0x54] sm:$0xf0]  ;;  %v2678_v4 = vld [vmem:[#allocation3 + $0x1d8] sm:$0xf0] }
  0xad   :  { %v222_v31 = vadd.f32 %v221_v26, %v91_v15  ;;  %v235_v32 = vpop.f32.mrf.mxu3  ;;  %1066 = vmatmul.bf16.vlgmr.msrb.gmra.mxu1 %v3988_v25  ;;  %1156 = vmatpush.bf16.msrb.mxu0 %v2565_v17  ;;  %v2629_v15 = vor.u32 %v3530_v9, %v2628_v8  ;;  %v3598_v17 = vld [vmem:[#allocation3 + $0x394] sm:$0xf0]  ;;  %v2773_v23 = vor.u32 %v3566_v13, %v2772_v12  ;;  %v2756_v26 = vld [vmem:[#allocation3 + $0x268] sm:$0xf] }
  0xae   :  { %v236_v36 = vadd.f32 %v235_v32, %v92_v16  ;;  %1170 = vmatpush.bf16.msrb.mxu1 %v2693_v21  ;;  %v2900_v16 = vld [vmem:[#allocation3 + $0x388] sm:$0xf]  ;;  %v2485_v28 = vor.u32 %v3494_v20, %v2484_v18  ;;  %v3522_v35 = vld [vmem:[#allocation3 + $0x134] sm:$0xf0]  ;;  %v2534_v18 = vld [vmem:[#allocation3 + $0xb8] sm:$0xf0] }
  0xaf   :  { %vm244_vm7 = vcmp.gt.f32.partialorder %v222_v31, 0.0  ;;  %v252_v39 = vmul.f32 0.2, %v222_v31  ;;  %v2612_v21 = vld [vmem:[#allocation3 + $0x148] sm:$0xf]  ;;  %v2901_v24 = vor.u32 %v3598_v17, %v2900_v16 }
  0xb0   :  { %vm245_vm8 = vcmp.gt.f32.partialorder %v236_v36, 0.0  ;;  %v253_v42 = vmul.f32 0.2, %v236_v36  ;;  %v2613_v29 = vor.u32 %v3526_v22, %v2612_v21  ;;  %v2884_v30 = vld [vmem:[#allocation3 + $0x368] sm:$0xf] }
  0xb1   :  { %v260_v45 = vsel %vm244_vm7, %v222_v31, %v252_v39  ;;  %1157 = vmatpush.bf16.msrb.mxu0 %v2549_v37  ;;  %v3594_v31 = vld [vmem:[#allocation3 + $0x374] sm:$0xf0]  ;;  %v2468_v32 = vld [vmem:[#allocation3 + $0x28] sm:$0xf]  ;;  %v3504_v16 = vld [vmem:[#allocation3 + $0xac] sm:$0xf] }
  0xb2   :  { %v3993_v49 = vpack.c.bf16 %v260_v45, %v256_v44  ;;  %v261_v50 = vsel %vm245_vm8, %v236_v36, %v253_v42  ;;  %1171 = vmatpush.bf16.msrb.mxu1 %v2677_v40  ;;  %v2757_v36 = vor.u32 %v3562_v27, %v2756_v26  ;;  %v2885_v37 = vor.u32 %v3594_v31, %v2884_v30  ;;  %v3558_v39 = vld [vmem:[#allocation3 + $0x254] sm:$0xf0]  ;;  %v2868_v40 = vld [vmem:[#allocation3 + $0x348] sm:$0xf]  ;;  %v3536_v20 = vld [vmem:[#allocation3 + $0x1ac] sm:$0xf] }
  0xb3   :  { %v3995_v55 = vpack.c.bf16 %v261_v50, %v257_v48  ;;  %v2469_v41 = vor.u32 %v3490_v33, %v2468_v32  ;;  %v2597_v42 = vor.u32 %v3522_v35, %v2596_v34  ;;  %v3590_v43 = vld [vmem:[#allocation3 + $0x354] sm:$0xf0]  ;;  %v2452_v44 = vld [vmem:[#allocation3 + $0x8] sm:$0xf]  ;;  %v3512_v48 = vld [vmem:[#allocation3 + $0xec] sm:$0xf]  ;;  %v2741_v50 = vor.u32 %v3558_v39, %v2740_v38 }
  0xb4   :  { %1080 = vmatmul.bf16.vlgmr.msrb.gmra.mxu2 %v3993_v49  ;;  %v3486_v45 = vld [vmem:[#allocation3 + $0x14] sm:$0xf0]  ;;  %v2869_v54 = vor.u32 %v3590_v43, %v2868_v40  ;;  %v2852_v60 = vld [vmem:[#allocation3 + $0x328] sm:$0xf]  ;;  %v2662_v21 = vld [vmem:[#allocation3 + $0x1b8] sm:$0xf0] }
  0xb5   :  { %1094 = vmatmul.bf16.vlgmr.msrb.gmra.mxu3 %v3995_v55  ;;  %1184 = vmatpush.bf16.msrb.mxu2 %v2821_v46  ;;  %v2580_v46 = vld [vmem:[#allocation3 + $0x108] sm:$0xf]  ;;  %v3554_v57 = vld [vmem:[#allocation3 + $0x234] sm:$0xf0]  ;;  %v2453_v58 = vor.u32 %v3486_v45, %v2452_v44  ;;  %v3572_v26 = vld [vmem:[#allocation3 + $0x2cc] sm:$0xf] }
  0xb6   :  { %1198 = vmatpush.bf16.msrb.mxu3 %v2949_v47  ;;  %1158 = vmatpush.bf16.msrb.mxu0 %v2533_v51  ;;  %v3518_v47 = vld [vmem:[#allocation3 + $0x114] sm:$0xf0]  ;;  %v2566_v51 = vld [vmem:[#allocation3 + $0xf8] sm:$0xf0]  ;;  %v2708_v6 = vld [vmem:[#allocation3 + $0x208] sm:$0xf] }
  0xb7   :  { %1172 = vmatpush.bf16.msrb.mxu1 %v2661_v56  ;;  %v2724_v56 = vld [vmem:[#allocation3 + $0x228] sm:$0xf]  ;;  %v2581_v59 = vor.u32 %v3518_v47, %v2580_v46  ;;  %v3586_v61 = vld [vmem:[#allocation3 + $0x334] sm:$0xf0]  ;;  %v2806_v27 = vld [vmem:[#allocation3 + $0x2d8] sm:$0xf0] }
  0xb8   :  { %v2725_v1 = vor.u32 %v3554_v57, %v2724_v56  ;;  %v2853_v5 = vor.u32 %v3586_v61, %v2852_v60  ;;  %v3550_v7 = vld [vmem:[#allocation3 + $0x214] sm:$0xf0]  ;;  %v2836_v8 = vld [vmem:[#allocation3 + $0x308] sm:$0xf]  ;;  %v3604_v30 = vld [vmem:[#allocation3 + $0x3cc] sm:$0xf] }
  0xb9   :  { %1185 = vmatpush.bf16.msrb.mxu2 %v2805_v62  ;;  %v2569_v62 = vor.u32 %v3512_v48, %v2566_v51  ;;  %v3582_v9 = vld [vmem:[#allocation3 + $0x314] sm:$0xf0]  ;;  %v2709_v17 = vor.u32 %v3550_v7, %v2708_v6  ;;  %v2934_v31 = vld [vmem:[#allocation3 + $0x3d8] sm:$0xf0]  ;;  %v3500_v32 = vld [vmem:[#allocation3 + $0x8c] sm:$0xf] }
  0xba   :  { %1199 = vmatpush.bf16.msrb.mxu3 %v2933_v63  ;;  %1159 = vmatpush.bf16.msrb.mxu0 %v2517_v0  ;;  %v2697_v63 = vor.u32 %v3544_v52, %v2694_v53  ;;  %v3508_v0 = vld [vmem:[#allocation3 + $0xcc] sm:$0xf]  ;;  %v2837_v22 = vor.u32 %v3582_v9, %v2836_v8  ;;  %v2518_v33 = vld [vmem:[#allocation3 + $0x98] sm:$0xf0] }
  0xbb   :  { %1173 = vmatpush.bf16.msrb.mxu1 %v2645_v3  ;;  %v3540_v3 = vld [vmem:[#allocation3 + $0x1cc] sm:$0xf]  ;;  %v2553_v12 = vor.u32 %v3508_v0, %v2550_v2  ;;  %v2646_v35 = vld [vmem:[#allocation3 + $0x198] sm:$0xf0]  ;;  %v2521_v40 = vor.u32 %v3500_v32, %v2518_v33 }
  0xbc   :  { %1108 = vmatmul.bf16.vlgmr.msra.gmra.mxu0 %v3986_v19  ;;  %v2681_v13 = vor.u32 %v3540_v3, %v2678_v4  ;;  %v3532_v34 = vld [vmem:[#allocation3 + $0x18c] sm:$0xf]  ;;  %v2790_v39 = vld [vmem:[#allocation3 + $0x2b8] sm:$0xf0] }
  0xbd   :  { %1186 = vmatpush.bf16.msrb.mxu2 %v2789_v10  ;;  %1122 = vmatmul.bf16.vlgmr.msra.gmra.mxu1 %v3988_v25  ;;  %v3576_v10 = vld [vmem:[#allocation3 + $0x2ec] sm:$0xf]  ;;  %v2918_v43 = vld [vmem:[#allocation3 + $0x3b8] sm:$0xf0] }
  0xbe   :  { %1200 = vmatpush.bf16.msrb.mxu3 %v2917_v11  ;;  %1160 = vmatpush.bf16.msrb.mxu0 %v2501_v14  ;;  %v2822_v11 = vld [vmem:[#allocation3 + $0x2f8] sm:$0xf0]  ;;  %v3608_v14 = vld [vmem:[#allocation3 + $0x3ec] sm:$0xf] }
  0xbf   :  { %1174 = vmatpush.bf16.msrb.mxu1 %v2629_v15  ;;  %v2950_v15 = vld [vmem:[#allocation3 + $0x3f8] sm:$0xf0]  ;;  %v3568_v38 = vld [vmem:[#allocation3 + $0x2ac] sm:$0xf] }
  0xc0   :  { %v3496_v44 = vld [vmem:[#allocation3 + $0x6c] sm:$0xf]  ;;  %v2502_v45 = vld [vmem:[#allocation3 + $0x78] sm:$0xf0]  ;;  %v2793_v48 = vor.u32 %v3568_v38, %v2790_v39 }
  0xc1   :  { %1187 = vmatpush.bf16.msrb.mxu2 %v2773_v23  ;;  %v2825_v23 = vor.u32 %v3576_v10, %v2822_v11  ;;  %v3528_v46 = vld [vmem:[#allocation3 + $0x16c] sm:$0xf]  ;;  %v2630_v47 = vld [vmem:[#allocation3 + $0x178] sm:$0xf0]  ;;  %v2505_v53 = vor.u32 %v3496_v44, %v2502_v45 }
  0xc2   :  { %1201 = vmatpush.bf16.msrb.mxu3 %v2901_v24  ;;  %1161 = vmatpush.bf16.msrb.mxu0 %v2485_v28  ;;  %v2953_v24 = vor.u32 %v3608_v14, %v2950_v15  ;;  %v2537_v28 = vor.u32 %v3504_v16, %v2534_v18  ;;  %v3564_v51 = vld [vmem:[#allocation3 + $0x28c] sm:$0xf]  ;;  %v2774_v52 = vld [vmem:[#allocation3 + $0x298] sm:$0xf0] }
  0xc3   :  { %1175 = vmatpush.bf16.msrb.mxu1 %v2613_v29  ;;  %v2665_v29 = vor.u32 %v3536_v20, %v2662_v21  ;;  %v3596_v56 = vld [vmem:[#allocation3 + $0x38c] sm:$0xf]  ;;  %v2902_v57 = vld [vmem:[#allocation3 + $0x398] sm:$0xf0] }
  0xc4   :  { %1136 = vmatmul.bf16.vlgmr.msra.gmra.mxu2 %v3993_v49  ;;  %v3524_v60 = vld [vmem:[#allocation3 + $0x14c] sm:$0xf]  ;;  %v2614_v61 = vld [vmem:[#allocation3 + $0x158] sm:$0xf0] }
  0xc5   :  { %1150 = vmatmul.bf16.vlgmr.msra.gmra.mxu3 %v3995_v55  ;;  %1188 = vmatpush.bf16.msrb.mxu2 %v2757_v36  ;;  %v2809_v36 = vor.u32 %v3572_v26, %v2806_v27  ;;  %v3560_v0 = vld [vmem:[#allocation3 + $0x26c] sm:$0xf]  ;;  %v2617_v3 = vor.u32 %v3524_v60, %v2614_v61  ;;  %v2470_v7 = vld [vmem:[#allocation3 + $0x38] sm:$0xf0]  ;;  %v3641_v26 = vld [vmem:[#allocation5 + $0xec] sm:$0xf0] }
  0xc6   :  { %1202 = vmatpush.bf16.msrb.mxu3 %v2885_v37  ;;  %1162 = vmatpush.bf16.msrb.mxu0 %v2469_v41  ;;  %v2937_v37 = vor.u32 %v3604_v30, %v2934_v31  ;;  %v2649_v41 = vor.u32 %v3532_v34, %v2646_v35  ;;  %v3592_v4 = vld [vmem:[#allocation3 + $0x36c] sm:$0xf]  ;;  %v2598_v9 = vld [vmem:[#allocation3 + $0x138] sm:$0xf0]  ;;  %v3196_v27 = vld [vmem:[#allocation5 + $0x1e0] sm:$0xf] }
  0xc7   :  { %1176 = vmatpush.bf16.msrb.mxu1 %v2597_v42  ;;  %v3600_v42 = vld [vmem:[#allocation3 + $0x3ac] sm:$0xf]  ;;  %v2454_v20 = vld [vmem:[#allocation3 + $0x18] sm:$0xf0]  ;;  %v3629_v60 = vld [vmem:[#allocation5 + $0x8c] sm:$0xf0] }
  0xc8   :  { %v3488_v6 = vld [vmem:[#allocation3 + $0x2c] sm:$0xf]  ;;  %v2726_v31 = vld [vmem:[#allocation3 + $0x238] sm:$0xf0] }
  0xc9   :  { %1189 = vmatpush.bf16.msrb.mxu2 %v2741_v50  ;;  %v2921_v50 = vor.u32 %v3600_v42, %v2918_v43  ;;  %v3520_v8 = vld [vmem:[#allocation3 + $0x12c] sm:$0xf]  ;;  %v2473_v15 = vor.u32 %v3488_v6, %v2470_v7  ;;  %v2854_v35 = vld [vmem:[#allocation3 + $0x338] sm:$0xf0]  ;;  %v3669_v42 = vld [vmem:[#allocation5 + $0x1cc] sm:$0xf0] }
  0xca   :  { %1203 = vmatpush.bf16.msrb.mxu3 %v2869_v54  ;;  %1163 = vmatpush.bf16.msrb.mxu0 %v2453_v58  ;;  %v2633_v54 = vor.u32 %v3528_v46, %v2630_v47  ;;  %v3492_v58 = vld [vmem:[#allocation3 + $0x4c] sm:$0xf]  ;;  %v2601_v16 = vor.u32 %v3520_v8, %v2598_v9  ;;  %v2710_v45 = vld [vmem:[#allocation3 + $0x218] sm:$0xf0]  ;;  %v2956_v6 = vld [vmem:[#allocation5] sm:$0xf] }
  0xcb   :  { %1177 = vmatpush.bf16.msrb.mxu1 %v2581_v59  ;;  %v2486_v59 = vld [vmem:[#allocation3 + $0x58] sm:$0xf0]  ;;  %v3588_v14 = vld [vmem:[#allocation3 + $0x34c] sm:$0xf]  ;;  %v3148_v7 = vld [vmem:[#allocation5 + $0x180] sm:$0xf] }
  0xcc   :  { %v2489_v2 = vor.u32 %v3492_v58, %v2486_v59  ;;  %v3484_v18 = vld [vmem:[#allocation3 + $0xc] sm:$0xf]  ;;  %v2838_v47 = vld [vmem:[#allocation3 + $0x318] sm:$0xf0]  ;;  %v3020_v59 = vld [vmem:[#allocation5 + $0x80] sm:$0xf] }
  0xcd   :  { %1190 = vmatpush.bf16.msrb.mxu2 %v2725_v1  ;;  %1164 = vmatmul.bf16.vlgmr.msrb.gmra.mxu0 %v3986_v19  ;;  %v2758_v1 = vld [vmem:[#allocation3 + $0x278] sm:$0xf0]  ;;  %v3516_v21 = vld [vmem:[#allocation3 + $0x10c] sm:$0xf]  ;;  %v2457_v32 = vor.u32 %v3484_v18, %v2454_v20  ;;  %v3661_v9 = vld [vmem:[#allocation5 + $0x18c] sm:$0xf0] }
  0xce   :  { %1212 = vmatpush.bf16.msra.mxu0 %v2569_v62  ;;  %1204 = vmatpush.bf16.msrb.mxu3 %v2853_v5  ;;  %v2777_v62 = vor.u32 %v3564_v51, %v2774_v52  ;;  %v2886_v5 = vld [vmem:[#allocation3 + $0x378] sm:$0xf0]  ;;  %v2761_v10 = vor.u32 %v3560_v0, %v2758_v1  ;;  %v3552_v30 = vld [vmem:[#allocation3 + $0x22c] sm:$0xf]  ;;  %v3036_v52 = vld [vmem:[#allocation5 + $0xa0] sm:$0xf] }
  0xcf   :  { %1226 = vmatpush.bf16.msra.mxu1 %v2697_v63  ;;  %v2905_v63 = vor.u32 %v3596_v56, %v2902_v57  ;;  %v2889_v11 = vor.u32 %v3592_v4, %v2886_v5  ;;  %v3584_v34 = vld [vmem:[#allocation3 + $0x32c] sm:$0xf]  ;;  %v2729_v39 = vor.u32 %v3552_v30, %v2726_v31  ;;  %v3164_v56 = vld [vmem:[#allocation5 + $0x1a0] sm:$0xf]  ;;  %v3665_v57 = vld [vmem:[#allocation5 + $0x1ac] sm:$0xf0] }
  0xd0   :  { %1178 = vmatmul.bf16.vlgmr.msrb.gmra.mxu1 %v3988_v25  ;;  %v2857_v43 = vor.u32 %v3584_v34, %v2854_v35  ;;  %v3548_v44 = vld [vmem:[#allocation3 + $0x20c] sm:$0xf]  ;;  %v3165_v61 = vor.u32 %v3665_v57, %v3164_v56  ;;  %v3621_v1 = vld [vmem:[#allocation5 + $0x4c] sm:$0xf0]  ;;  %v3635_v18 = vld [vmem:[#allocation5 + $0xc4] sm:$0xf] }
  0xd1   :  { %1191 = vmatpush.bf16.msrb.mxu2 %v2709_v17  ;;  %v2870_v17 = vld [vmem:[#allocation3 + $0x358] sm:$0xf0]  ;;  %v3580_v46 = vld [vmem:[#allocation3 + $0x30c] sm:$0xf]  ;;  %v2713_v51 = vor.u32 %v3548_v44, %v2710_v45  ;;  %v3617_v4 = vld [vmem:[#allocation5 + $0x2c] sm:$0xf0] }
  0xd2   :  { %1213 = vmatpush.bf16.msra.mxu0 %v2553_v12  ;;  %1205 = vmatpush.bf16.msrb.mxu3 %v2837_v22  ;;  %v3556_v12 = vld [vmem:[#allocation3 + $0x24c] sm:$0xf]  ;;  %v2582_v22 = vld [vmem:[#allocation3 + $0x118] sm:$0xf0]  ;;  %v3054_v20 = vld [vmem:[#allocation5 + $0xd0] sm:$0xf0] }
  0xd3   :  { %1227 = vmatpush.bf16.msra.mxu1 %v2681_v13  ;;  %v2742_v13 = vld [vmem:[#allocation3 + $0x258] sm:$0xf0]  ;;  %v2585_v33 = vor.u32 %v3516_v21, %v2582_v22  ;;  %v3057_v22 = vor.u32 %v3635_v18, %v3054_v20  ;;  %v3038_v30 = vld [vmem:[#allocation5 + $0xb0] sm:$0xf0]  ;;  %v3649_v34 = vld [vmem:[#allocation5 + $0x12c] sm:$0xf0] }
  0xd4   :  { %1192 = vmatmul.bf16.vlgmr.msrb.gmra.mxu2 %v3993_v49  ;;  %v3292_v35 = vld [vmem:[#allocation5 + $0x2a0] sm:$0xf]  ;;  %v3689_v57 = vld [vmem:[#allocation5 + $0x26c] sm:$0xf0] }
  0xd5   :  { %1240 = vmatpush.bf16.msra.mxu2 %v2825_v23  ;;  %1206 = vmatmul.bf16.vlgmr.msrb.gmra.mxu3 %v3995_v55  ;;  %v3068_v23 = vld [vmem:[#allocation5 + $0xe0] sm:$0xf] }
  0xd6   :  { %1254 = vmatpush.bf16.msra.mxu3 %v2953_v24  ;;  %1214 = vmatpush.bf16.msra.mxu0 %v2537_v28  ;;  %v2745_v24 = vor.u32 %v3556_v12, %v2742_v13  ;;  %v3673_v28 = vld [vmem:[#allocation5 + $0x1ec] sm:$0xf0]  ;;  %v3132_v13 = vld [vmem:[#allocation5 + $0x160] sm:$0xf] }
  0xd7   :  { %1228 = vmatpush.bf16.msra.mxu1 %v2665_v29  ;;  %v2873_v29 = vor.u32 %v3588_v14, %v2870_v17  ;;  %v3197_v38 = vor.u32 %v3673_v28, %v3196_v27  ;;  %v3657_v14 = vld [vmem:[#allocation5 + $0x16c] sm:$0xf0]  ;;  %v3276_v44 = vld [vmem:[#allocation5 + $0x280] sm:$0xf] }
  0xd8   :  { %v3705_v17 = vld [vmem:[#allocation5 + $0x2ec] sm:$0xf0]  ;;  %v3260_v56 = vld [vmem:[#allocation5 + $0x260] sm:$0xf] }
  0xd9   :  { %1241 = vmatpush.bf16.msra.mxu2 %v2809_v36  ;;  %v3069_v36 = vor.u32 %v3641_v26, %v3068_v23  ;;  %v3116_v23 = vld [vmem:[#allocation5 + $0x140] sm:$0xf]  ;;  %v3701_v28 = vld [vmem:[#allocation5 + $0x2cc] sm:$0xf0] }
  0xda   :  { %1255 = vmatpush.bf16.msra.mxu3 %v2937_v37  ;;  %1215 = vmatpush.bf16.msra.mxu0 %v2521_v40  ;;  %v3052_v37 = vld [vmem:[#allocation5 + $0xc0] sm:$0xf]  ;;  %v3637_v40 = vld [vmem:[#allocation5 + $0xcc] sm:$0xf0] }
  0xdb   :  { %1229 = vmatpush.bf16.msra.mxu1 %v2649_v41  ;;  %v3180_v41 = vld [vmem:[#allocation5 + $0x1c0] sm:$0xf] }
  0xdc   :  { %v3308_v26 = vld [vmem:[#allocation5 + $0x2c0] sm:$0xf] }
  0xdd   :  { %1242 = vmatpush.bf16.msra.mxu2 %v2793_v48  ;;  %v3053_v48 = vor.u32 %v3637_v40, %v3052_v37  ;;  %v3309_v31 = vor.u32 %v3701_v28, %v3308_v26  ;;  %v3697_v37 = vld [vmem:[#allocation5 + $0x2ac] sm:$0xf0]  ;;  %v3452_v18 = vld [vmem:[#allocation5 + $0x3e0] sm:$0xf]  ;;  %v3703_v28 = vld [vmem:[#allocation5 + $0x2e4] sm:$0xf] }
  0xde   :  { %1256 = vmatpush.bf16.msra.mxu3 %v2921_v50  ;;  %1216 = vmatpush.bf16.msra.mxu0 %v2505_v53  ;;  %v3181_v50 = vor.u32 %v3669_v42, %v3180_v41  ;;  %v3633_v53 = vld [vmem:[#allocation5 + $0xac] sm:$0xf0]  ;;  %v3293_v40 = vor.u32 %v3697_v37, %v3292_v35  ;;  %v3084_v42 = vld [vmem:[#allocation5 + $0x100] sm:$0xf]  ;;  %v3651_v35 = vld [vmem:[#allocation5 + $0x144] sm:$0xf] }
  0xdf   :  { %1230 = vmatpush.bf16.msra.mxu1 %v2633_v54  ;;  %v2841_v54 = vor.u32 %v3580_v46, %v2838_v47  ;;  %v3037_v58 = vor.u32 %v3633_v53, %v3036_v52  ;;  %v3693_v46 = vld [vmem:[#allocation5 + $0x28c] sm:$0xf0]  ;;  %v3623_v47 = vld [vmem:[#allocation5 + $0x64] sm:$0xf]  ;;  %v3198_v53 = vld [vmem:[#allocation5 + $0x1f0] sm:$0xf0] }
  0xe0   :  { %v3671_v52 = vld [vmem:[#allocation5 + $0x1e4] sm:$0xf] }
  0xe1   :  { %1243 = vmatpush.bf16.msra.mxu2 %v2777_v62  ;;  %v3021_v62 = vor.u32 %v3629_v60, %v3020_v59  ;;  %v3619_v59 = vld [vmem:[#allocation5 + $0x44] sm:$0xf]  ;;  %v2990_v60 = vld [vmem:[#allocation5 + $0x50] sm:$0xf0] }
  0xe2   :  { %1257 = vmatpush.bf16.msra.mxu3 %v2905_v63  ;;  %1217 = vmatpush.bf16.msra.mxu0 %v2489_v2  ;;  %v3625_v63 = vld [vmem:[#allocation5 + $0x6c] sm:$0xf0]  ;;  %v3699_v37 = vld [vmem:[#allocation5 + $0x2c4] sm:$0xf] }
  0xe3   :  { %1231 = vmatpush.bf16.msra.mxu1 %v2617_v3  ;;  %v2972_v3 = vld [vmem:[#allocation5 + $0x20] sm:$0xf] }
  0xe4   :  { %v2973_v5 = vor.u32 %v3617_v4, %v2972_v3  ;;  %v2974_v3 = vld [vmem:[#allocation5 + $0x30] sm:$0xf0]  ;;  %v3663_v4 = vld [vmem:[#allocation5 + $0x1a4] sm:$0xf] }
  0xe5   :  { %1244 = vmatpush.bf16.msra.mxu2 %v2761_v10  ;;  %v3070_v10 = vld [vmem:[#allocation5 + $0xf0] sm:$0xf0] }
  0xe6   :  { %1258 = vmatpush.bf16.msra.mxu3 %v2889_v11  ;;  %1218 = vmatpush.bf16.msra.mxu0 %v2473_v15  ;;  %v3149_v11 = vor.u32 %v3661_v9, %v3148_v7  ;;  %v3324_v15 = vld [vmem:[#allocation5 + $0x2e0] sm:$0xf] }
  0xe7   :  { %1232 = vmatpush.bf16.msra.mxu1 %v2601_v16  ;;  %v3133_v16 = vor.u32 %v3657_v14, %v3132_v13  ;;  %v3325_v21 = vor.u32 %v3705_v17, %v3324_v15  ;;  %v3228_v7 = vld [vmem:[#allocation5 + $0x220] sm:$0xf]  ;;  %v3150_v13 = vld [vmem:[#allocation5 + $0x190] sm:$0xf0]  ;;  %v3677_v17 = vld [vmem:[#allocation5 + $0x20c] sm:$0xf0] }
  0xe9   :  { %1245 = vmatpush.bf16.msra.mxu2 %v2745_v24  ;;  %v3653_v24 = vld [vmem:[#allocation5 + $0x14c] sm:$0xf0] }
  0xea   :  { %1259 = vmatpush.bf16.msra.mxu3 %v2873_v29  ;;  %1219 = vmatpush.bf16.msra.mxu0 %v2457_v32  ;;  %v3117_v27 = vor.u32 %v3653_v24, %v3116_v23  ;;  %v3631_v29 = vld [vmem:[#allocation5 + $0xa4] sm:$0xf]  ;;  %v3134_v23 = vld [vmem:[#allocation5 + $0x170] sm:$0xf0] }
  0xeb   :  { %1233 = vmatpush.bf16.msra.mxu1 %v2585_v33  ;;  %v3041_v32 = vor.u32 %v3631_v29, %v3038_v30  ;;  %v3100_v33 = vld [vmem:[#allocation5 + $0x120] sm:$0xf]  ;;  %v3326_v29 = vld [vmem:[#allocation5 + $0x2f0] sm:$0xf0] }
  0xec   :  { %v4014_v30 = vld [vmem:[%s4069_s4] sm:$0xf] }
  0xed   :  { %1246 = vmatpush.bf16.msra.mxu2 %v2729_v39  ;;  %1220 = vmatmul.bf16.vlgmr.msra.gmra.mxu0 %v3986_v19  ;;  %v3004_v19 = vld [vmem:[#allocation5 + $0x60] sm:$0xf]  ;;  %v3022_v39 = vld [vmem:[#allocation5 + $0x90] sm:$0xf0] }
  0xee   :  { %2074 = vmatpush.bf16.msrb.mxu0 %v3069_v36  ;;  %1260 = vmatpush.bf16.msra.mxu3 %v2857_v43  ;;  %v3005_v0 = vor.u32 %v3625_v63, %v3004_v19  ;;  %v3101_v36 = vor.u32 %v3649_v34, %v3100_v33  ;;  %v3645_v43 = vld [vmem:[#allocation5 + $0x10c] sm:$0xf0]  ;;  %v3182_v19 = vld [vmem:[#allocation5 + $0x1d0] sm:$0xf0] }
  0xef   :  { %2088 = vmatpush.bf16.msrb.mxu1 %v3197_v38  ;;  %v3627_v38 = vld [vmem:[#allocation5 + $0x84] sm:$0xf]  ;;  %v3085_v45 = vor.u32 %v3645_v43, %v3084_v42  ;;  %v3733_v33 = vld [vmem:[#allocation5 + $0x3cc] sm:$0xf0]  ;;  %v3420_v43 = vld [vmem:[#allocation5 + $0x3a0] sm:$0xf] }
  0xf0   :  { %1234 = vmatmul.bf16.vlgmr.msra.gmra.mxu1 %v3988_v25  ;;  %v2988_v25 = vld [vmem:[#allocation5 + $0x40] sm:$0xf]  ;;  %v3025_v41 = vor.u32 %v3627_v38, %v3022_v39  ;;  %v396_v38 = vperm.slane %v4014_v30, 0 }
  0xf1   :  { %1247 = vmatpush.bf16.msra.mxu2 %v2713_v51  ;;  %v2989_v2 = vor.u32 %v3621_v1, %v2988_v25  ;;  %v3685_v25 = vld [vmem:[#allocation5 + $0x24c] sm:$0xf0] }
  0xf2   :  { %2075 = vmatpush.bf16.msrb.mxu0 %v3053_v48  ;;  %1261 = vmatpush.bf16.msra.mxu3 %v2841_v54  ;;  %v3006_v48 = vld [vmem:[#allocation5 + $0x70] sm:$0xf0]  ;;  %v3201_v54 = vor.u32 %v3671_v52, %v3198_v53 }
  0xf3   :  { %2089 = vmatpush.bf16.msrb.mxu1 %v3181_v50  ;;  %v3277_v50 = vor.u32 %v3693_v46, %v3276_v44  ;;  %v3009_v51 = vor.u32 %v3623_v47, %v3006_v48  ;;  %v3729_v44 = vld [vmem:[#allocation5 + $0x3ac] sm:$0xf0]  ;;  %v3647_v46 = vld [vmem:[#allocation5 + $0x124] sm:$0xf]  ;;  %v3102_v47 = vld [vmem:[#allocation5 + $0x130] sm:$0xf0] }
  0xf4   :  { %1248 = vmatmul.bf16.vlgmr.msra.gmra.mxu2 %v3993_v49  ;;  %v3613_v49 = vld [vmem:[#allocation5 + $0xc] sm:$0xf0]  ;;  %v3695_v48 = vld [vmem:[#allocation5 + $0x2a4] sm:$0xf]  ;;  %v3294_v52 = vld [vmem:[#allocation5 + $0x2b0] sm:$0xf0] }
  0xf5   :  { %1262 = vmatmul.bf16.vlgmr.msra.gmra.mxu3 %v3995_v55  ;;  %v2957_v8 = vor.u32 %v3613_v49, %v2956_v6  ;;  %v3639_v55 = vld [vmem:[#allocation5 + $0xe4] sm:$0xf]  ;;  %2102 = vmatpush.bf16.msrb.mxu2 %v3325_v21  ;;  %v3166_v6 = vld [vmem:[#allocation5 + $0x1b0] sm:$0xf0]  ;;  %v3737_v21 = vld [vmem:[#allocation5 + $0x3ec] sm:$0xf0]  ;;  %v3297_v53 = vor.u32 %v3695_v48, %v3294_v52 }
  0xf6   :  { %2076 = vmatpush.bf16.msrb.mxu0 %v3037_v58  ;;  %v3073_v12 = vor.u32 %v3639_v55, %v3070_v10  ;;  %v3261_v58 = vor.u32 %v3689_v57, %v3260_v56  ;;  %v3169_v49 = vor.u32 %v3663_v4, %v3166_v6  ;;  %v3611_v55 = vld [vmem:[#allocation5 + $0x4] sm:$0xf]  ;;  %v2958_v10 = vld [vmem:[#allocation5 + $0x10] sm:$0xf0]  ;;  %v3453_v26 = vor.u32 %v3737_v21, %v3452_v18  ;;  %v3404_v56 = vld [vmem:[#allocation5 + $0x380] sm:$0xf] }
  0xf7   :  { %2090 = vmatpush.bf16.msrb.mxu1 %v3165_v61  ;;  %v3667_v61 = vld [vmem:[#allocation5 + $0x1c4] sm:$0xf]  ;;  %v3725_v57 = vld [vmem:[#allocation5 + $0x38c] sm:$0xf0]  ;;  %v3214_v48 = vld [vmem:[#allocation5 + $0x210] sm:$0xf0] }
  0xf8   :  { %v3185_v63 = vor.u32 %v3667_v61, %v3182_v19  ;;  %2116 = vmatpush.bf16.msrb.mxu3 %v3453_v26  ;;  %v3086_v61 = vld [vmem:[#allocation5 + $0x110] sm:$0xf0]  ;;  %v3721_v6 = vld [vmem:[#allocation5 + $0x36c] sm:$0xf0] }
  0xf9   :  { %2103 = vmatpush.bf16.msrb.mxu2 %v3309_v31  ;;  %v3329_v31 = vor.u32 %v3703_v28, %v3326_v29  ;;  %v3356_v28 = vld [vmem:[#allocation5 + $0x320] sm:$0xf]  ;;  %v3713_v29 = vld [vmem:[#allocation5 + $0x32c] sm:$0xf0] }
  0xfa   :  { %2077 = vmatpush.bf16.msrb.mxu0 %v3021_v62  ;;  %v2993_v62 = vor.u32 %v3619_v59, %v2990_v60  ;;  %v3405_v59 = vor.u32 %v3725_v57, %v3404_v56  ;;  %v3643_v60 = vld [vmem:[#allocation5 + $0x104] sm:$0xf]  ;;  %v3454_v56 = vld [vmem:[#allocation5 + $0x3f0] sm:$0xf0] }
  0xfb   :  { %2091 = vmatpush.bf16.msrb.mxu1 %v3149_v11  ;;  %v3659_v11 = vld [vmem:[#allocation5 + $0x184] sm:$0xf] }
  0xfc   :  { %v3153_v14 = vor.u32 %v3659_v11, %v3150_v13  ;;  %v3372_v11 = vld [vmem:[#allocation5 + $0x340] sm:$0xf] }
  0xfd   :  { %2104 = vmatpush.bf16.msrb.mxu2 %v3293_v40  ;;  %v3310_v40 = vld [vmem:[#allocation5 + $0x2d0] sm:$0xf0] }
  0xfe   :  { %2078 = vmatpush.bf16.msrb.mxu0 %v3005_v0  ;;  %v3244_v0 = vld [vmem:[#allocation5 + $0x240] sm:$0xf] }
  0xff   :  { %2092 = vmatpush.bf16.msrb.mxu1 %v3133_v16  ;;  %v3245_v1 = vor.u32 %v3685_v25, %v3244_v0  ;;  %v3212_v16 = vld [vmem:[#allocation5 + $0x200] sm:$0xf]  ;;  %v3089_v0 = vor.u32 %v3643_v60, %v3086_v61  ;;  %v3278_v25 = vld [vmem:[#allocation5 + $0x290] sm:$0xf0] }
 0x100   :  { %v3213_v20 = vor.u32 %v3677_v17, %v3212_v16  ;;  %v3246_v16 = vld [vmem:[#allocation5 + $0x250] sm:$0xf0]  ;;  %v397_v17 = vperm.slane %v4014_v30, 1 }
 0x101   :  { %2105 = vmatpush.bf16.msrb.mxu2 %v3277_v50 }
 0x102   :  { %2079 = vmatpush.bf16.msrb.mxu0 %v2989_v2  ;;  %v3615_v2 = vld [vmem:[#allocation5 + $0x24] sm:$0xf] }
 0x103   :  { %2093 = vmatpush.bf16.msrb.mxu1 %v3117_v27 }
 0x105   :  { %2106 = vmatpush.bf16.msrb.mxu2 %v3261_v58 }
 0x106   :  { %2080 = vmatpush.bf16.msrb.mxu0 %v2973_v5  ;;  %v2977_v5 = vor.u32 %v3615_v2, %v2974_v3 }
 0x107   :  { %2094 = vmatpush.bf16.msrb.mxu1 %v3101_v36  ;;  %v3118_v36 = vld [vmem:[#allocation5 + $0x150] sm:$0xf0] }
 0x108   :  { %v3121_v39 = vor.u32 %v3651_v35, %v3118_v36 }
 0x109   :  { %2107 = vmatpush.bf16.msrb.mxu2 %v3245_v1 }
 0x10a   :  { %2081 = vmatpush.bf16.msrb.mxu0 %v2957_v8  ;;  %v3681_v8 = vld [vmem:[#allocation5 + $0x22c] sm:$0xf0] }
 0x10b   :  { %2095 = vmatpush.bf16.msrb.mxu1 %v3085_v45  ;;  %v3229_v9 = vor.u32 %v3681_v8, %v3228_v7  ;;  %v3421_v45 = vor.u32 %v3729_v44, %v3420_v43  ;;  %v3687_v7 = vld [vmem:[#allocation5 + $0x264] sm:$0xf]  ;;  %v3262_v8 = vld [vmem:[#allocation5 + $0x270] sm:$0xf0]  ;;  %v3340_v43 = vld [vmem:[#allocation5 + $0x300] sm:$0xf] }
 0x10d   :  { %2108 = vmatpush.bf16.msrb.mxu2 %v3229_v9  ;;  %v3265_v9 = vor.u32 %v3687_v7, %v3262_v8  ;;  %v3727_v7 = vld [vmem:[#allocation5 + $0x3a4] sm:$0xf]  ;;  %v3422_v8 = vld [vmem:[#allocation5 + $0x3b0] sm:$0xf0] }
 0x10e   :  { %2130 = vmatpush.bf16.msra.mxu0 %v3073_v12  ;;  %v2961_v12 = vor.u32 %v3611_v55, %v2958_v10 }
 0x10f   :  { %2144 = vmatpush.bf16.msra.mxu1 %v3201_v54 }
 0x111   :  { %2109 = vmatpush.bf16.msrb.mxu2 %v3213_v20 }
 0x112   :  { %2131 = vmatpush.bf16.msra.mxu0 %v3057_v22  ;;  %v3655_v22 = vld [vmem:[#allocation5 + $0x164] sm:$0xf] }
 0x113   :  { %2145 = vmatpush.bf16.msra.mxu1 %v3185_v63  ;;  %v3137_v27 = vor.u32 %v3655_v22, %v3134_v23  ;;  %v3076_v23 = vld [vmem:[#allocation5 + $0xe8] sm:$0xf] }
 0x115   :  { %2158 = vmatpush.bf16.msra.mxu2 %v3329_v31 }
 0x116   :  { %2132 = vmatpush.bf16.msra.mxu0 %v3041_v32  ;;  %v3436_v32 = vld [vmem:[#allocation5 + $0x3c0] sm:$0xf] }
 0x117   :  { %2146 = vmatpush.bf16.msra.mxu1 %v3169_v49  ;;  %v3437_v34 = vor.u32 %v3733_v33, %v3436_v32  ;;  %v3357_v32 = vor.u32 %v3713_v29, %v3356_v28  ;;  %v3679_v33 = vld [vmem:[#allocation5 + $0x224] sm:$0xf] }
 0x119   :  { %2117 = vmatpush.bf16.msrb.mxu3 %v3437_v34  ;;  %v3230_v34 = vld [vmem:[#allocation5 + $0x230] sm:$0xf0] }
 0x11a   :  { %2133 = vmatpush.bf16.msra.mxu0 %v3025_v41  ;;  %v3313_v41 = vor.u32 %v3699_v37, %v3310_v40  ;;  %v3233_v37 = vor.u32 %v3679_v33, %v3230_v34  ;;  %v3622_v33 = vld [vmem:[#allocation5 + $0x54] sm:$0xf0]  ;;  %v3188_v34 = vld [vmem:[#allocation5 + $0x1c8] sm:$0xf] }
 0x11b   :  { %2147 = vmatpush.bf16.msra.mxu1 %v3153_v14 }
 0x11c   :  { %2159 = vmatpush.bf16.msra.mxu2 %v3313_v41  ;;  %v3060_v41 = vld [vmem:[#allocation5 + $0xc8] sm:$0xf] }
 0x11d   :  { %2118 = vmatpush.bf16.msrb.mxu3 %v3421_v45 }
 0x11e   :  { %2134 = vmatpush.bf16.msra.mxu0 %v3009_v51  ;;  %v3105_v51 = vor.u32 %v3647_v46, %v3102_v47  ;;  %v3709_v46 = vld [vmem:[#allocation5 + $0x30c] sm:$0xf0]  ;;  %v3675_v47 = vld [vmem:[#allocation5 + $0x204] sm:$0xf] }
 0x11f   :  { %2148 = vmatpush.bf16.msra.mxu1 %v3137_v27  ;;  %v3341_v52 = vor.u32 %v3709_v46, %v3340_v43 }
 0x120   :  { %2160 = vmatpush.bf16.msra.mxu2 %v3297_v53  ;;  %v3217_v53 = vor.u32 %v3675_v47, %v3214_v48  ;;  %v2980_v47 = vld [vmem:[#allocation5 + $0x28] sm:$0xf]  ;;  %v3618_v48 = vld [vmem:[#allocation5 + $0x34] sm:$0xf0] }
 0x121   :  { %2119 = vmatpush.bf16.msrb.mxu3 %v3405_v59 }
 0x122   :  { %2135 = vmatpush.bf16.msra.mxu0 %v2993_v62  ;;  %v3691_v62 = vld [vmem:[#allocation5 + $0x284] sm:$0xf] }
 0x123   :  { %2149 = vmatpush.bf16.msra.mxu1 %v3121_v39  ;;  %v3281_v1 = vor.u32 %v3691_v62, %v3278_v25  ;;  %v3044_v62 = vld [vmem:[#allocation5 + $0xa8] sm:$0xf] }
 0x125   :  { %2161 = vmatpush.bf16.msra.mxu2 %v3281_v1 }
 0x126   :  { %2136 = vmatpush.bf16.msra.mxu0 %v2977_v5  ;;  %v3388_v5 = vld [vmem:[#allocation5 + $0x360] sm:$0xf] }
 0x127   :  { %2150 = vmatpush.bf16.msra.mxu1 %v3105_v51  ;;  %v3389_v49 = vor.u32 %v3721_v6, %v3388_v5  ;;  %v3028_v5 = vld [vmem:[#allocation5 + $0x88] sm:$0xf] }
 0x129   :  { %v1053_v15 = vpop.f32.mrf.mxu0  ;;  %2120 = vmatpush.bf16.msrb.mxu3 %v3389_v49  ;;  %2162 = vmatpush.bf16.msra.mxu2 %v3265_v9  ;;  %v3630_v49 = vld [vmem:[#allocation5 + $0x94] sm:$0xf0] }
 0x12a   :  { %2137 = vmatpush.bf16.msra.mxu0 %v2961_v12  ;;  %v1067_v24 = vpop.f32.mrf.mxu1  ;;  %v1054_v50 = vadd.f32 %v1053_v15, %v396_v38  ;;  %v3717_v12 = vld [vmem:[#allocation5 + $0x34c] sm:$0xf0]  ;;  %v3683_v15 = vld [vmem:[#allocation5 + $0x244] sm:$0xf] }
 0x12b   :  { %2151 = vmatpush.bf16.msra.mxu1 %v3089_v0  ;;  %v3373_v14 = vor.u32 %v3717_v12, %v3372_v11  ;;  %v3249_v22 = vor.u32 %v3683_v15, %v3246_v16  ;;  %v3438_v0 = vld [vmem:[#allocation5 + $0x3d0] sm:$0xf0]  ;;  %v398_v11 = vperm.slane %v4014_v30, 2  ;;  %v3012_v12 = vld [vmem:[#allocation5 + $0x68] sm:$0xf]  ;;  %v3029_v16 = vor.u32 %v3630_v49, %v3028_v5 }
 0x12c   :  { %v1068_v19 = vadd.f32 %v1067_v24, %v1054_v50  ;;  %v3642_v24 = vld [vmem:[#allocation5 + $0xf4] sm:$0xf0]  ;;  %v3078_v5 = vld [vmem:[#allocation5 + $0xf8] sm:$0xf0] }
 0x12d   :  { %2121 = vmatpush.bf16.msrb.mxu3 %v3373_v14  ;;  %2163 = vmatpush.bf16.msra.mxu2 %v3249_v22  ;;  %v3077_v40 = vor.u32 %v3642_v24, %v3076_v23 }
 0x131   :  { %v1055_v42 = vpop.f32.mrf.mxu0  ;;  %2122 = vmatpush.bf16.msrb.mxu3 %v3357_v32  ;;  %2164 = vmatpush.bf16.msra.mxu2 %v3233_v37  ;;  %v2996_v32 = vld [vmem:[#allocation5 + $0x48] sm:$0xf]  ;;  %v3670_v37 = vld [vmem:[#allocation5 + $0x1d4] sm:$0xf0] }
 0x132   :  { %v1069_v54 = vpop.f32.mrf.mxu1  ;;  %v1056_v2 = vadd.f32 %v1055_v42, %v396_v38  ;;  %v3638_v42 = vld [vmem:[#allocation5 + $0xd4] sm:$0xf0]  ;;  %v3189_v46 = vor.u32 %v3670_v37, %v3188_v34  ;;  %v3046_v37 = vld [vmem:[#allocation5 + $0xb8] sm:$0xf0] }
 0x133   :  { %v3061_v61 = vor.u32 %v3638_v42, %v3060_v41  ;;  %v3702_v34 = vld [vmem:[#allocation5 + $0x2d4] sm:$0xf0] }
 0x134   :  { %v1070_v55 = vadd.f32 %v1069_v54, %v1056_v2  ;;  %v3735_v54 = vld [vmem:[#allocation5 + $0x3e4] sm:$0xf] }
 0x135   :  { %v3457_v57 = vor.u32 %v3735_v54, %v3454_v56  ;;  %2123 = vmatpush.bf16.msrb.mxu3 %v3341_v52  ;;  %2165 = vmatpush.bf16.msra.mxu2 %v3217_v53  ;;  %v3666_v53 = vld [vmem:[#allocation5 + $0x1b4] sm:$0xf0]  ;;  %v3715_v54 = vld [vmem:[#allocation5 + $0x344] sm:$0xf]  ;;  %v3374_v56 = vld [vmem:[#allocation5 + $0x350] sm:$0xf0] }
 0x137   :  { %v1081_v58 = vpop.f32.mrf.mxu2 }
 0x138   :  { %v1095_v63 = vpop.f32.mrf.mxu3  ;;  %v1082_v3 = vadd.f32 %v1081_v58, %v1068_v19  ;;  %v3634_v19 = vld [vmem:[#allocation5 + $0xb4] sm:$0xf0] }
 0x139   :  { %v1109_v4 = vpop.f32.mrf.mxu0  ;;  %2172 = vmatpush.bf16.msra.mxu3 %v3457_v57  ;;  %v3377_v57 = vor.u32 %v3715_v54, %v3374_v56  ;;  %v3092_v54 = vld [vmem:[#allocation5 + $0x108] sm:$0xf]  ;;  %v3646_v56 = vld [vmem:[#allocation5 + $0x114] sm:$0xf0] }
 0x13a   :  { %v1096_v10 = vadd.f32 %v1095_v63, %v1082_v3  ;;  %v1123_v18 = vpop.f32.mrf.mxu1  ;;  %v1110_v35 = vadd.f32 %v1109_v4, %v397_v17  ;;  %v3731_v63 = vld [vmem:[#allocation5 + $0x3c4] sm:$0xf]  ;;  %v3045_v4 = vor.u32 %v3634_v19, %v3044_v62  ;;  %v3614_v62 = vld [vmem:[#allocation5 + $0x14] sm:$0xf0]  ;;  %v3156_v19 = vld [vmem:[#allocation5 + $0x188] sm:$0xf] }
 0x13b   :  { %v3441_v25 = vor.u32 %v3731_v63, %v3438_v0 }
 0x13c   :  { %v1276_v26 = vmul.f32 0.2, %v1096_v10  ;;  %vm1268_vm9 = vcmp.gt.f32.partialorder %v1096_v10, 0.0  ;;  %v1124_v50 = vadd.f32 %v1123_v18, %v1110_v35  ;;  %v3674_v18 = vld [vmem:[#allocation5 + $0x1f4] sm:$0xf0] }
 0x13d   :  { %2173 = vmatpush.bf16.msra.mxu3 %v3441_v25  ;;  %v3662_v25 = vld [vmem:[#allocation5 + $0x194] sm:$0xf0] }
 0x13e   :  { %v1284_v38 = vsel %vm1268_vm9, %v1096_v10, %v1276_v26  ;;  %v3425_v10 = vor.u32 %v3727_v7, %v3422_v8  ;;  %v3140_v7 = vld [vmem:[#allocation5 + $0x168] sm:$0xf]  ;;  %vm2361_vm9 = vcmask 7168  }
 0x13f   :  { %v1083_v13 = vpop.f32.mrf.mxu2 }
 0x140   :  { %v1084_v20 = vadd.f32 %v1083_v13, %v1070_v55  ;;  %v1097_v21 = vpop.f32.mrf.mxu3  ;;  %v3626_v13 = vld [vmem:[#allocation5 + $0x74] sm:$0xf0] }
 0x141   :  { %v1111_v31 = vpop.f32.mrf.mxu0  ;;  %2174 = vmatpush.bf16.msra.mxu3 %v3425_v10  ;;  %v3013_v29 = vor.u32 %v3626_v13, %v3012_v12  ;;  %v3658_v10 = vld [vmem:[#allocation5 + $0x174] sm:$0xf0] }
 0x142   :  { %v1098_v27 = vadd.f32 %v1097_v21, %v1084_v20  ;;  %v1112_v58 = vadd.f32 %v1111_v31, %v397_v17  ;;  %v1125_v59 = vpop.f32.mrf.mxu1  ;;  %v3204_v17 = vld [vmem:[#allocation5 + $0x1e8] sm:$0xf]  ;;  %v3723_v20 = vld [vmem:[#allocation5 + $0x384] sm:$0xf]  ;;  %v3406_v21 = vld [vmem:[#allocation5 + $0x390] sm:$0xf0] }
 0x143   :  { %v3409_v24 = vor.u32 %v3723_v20, %v3406_v21  ;;  %v3205_v31 = vor.u32 %v3674_v18, %v3204_v17  ;;  %v3706_v12 = vld [vmem:[#allocation5 + $0x2f4] sm:$0xf0]  ;;  %v3342_v17 = vld [vmem:[#allocation5 + $0x310] sm:$0xf0]  ;;  %v3636_v18 = vld [vmem:[#allocation5 + $0xcc] sm:$0xf] }
 0x144   :  { %vm1272_vm10 = vcmp.gt.f32.partialorder %v1098_v27, 0.0  ;;  %v1280_v36 = vmul.f32 0.2, %v1098_v27  ;;  %v1126_v2 = vadd.f32 %v1125_v59, %v1112_v58  ;;  %v2981_v59 = vor.u32 %v3618_v48, %v2980_v47  ;;  %v3062_v20 = vld [vmem:[#allocation5 + $0xd8] sm:$0xf0] }
 0x145   :  { %2175 = vmatpush.bf16.msra.mxu3 %v3409_v24  ;;  %v3628_v47 = vld [vmem:[#allocation5 + $0x8c] sm:$0xf]  ;;  %v3030_v48 = vld [vmem:[#allocation5 + $0x98] sm:$0xf0] }
 0x146   :  { %v1288_v39 = vsel %vm1272_vm10, %v1098_v27, %v1280_v36 }
 0x147   :  { %v4018_v44 = vpack.c.bf16 %v1288_v39, %v1284_v38  ;;  %v1137_v45 = vpop.f32.mrf.mxu2  ;;  %v3719_v38 = vld [vmem:[#allocation5 + $0x364] sm:$0xf]  ;;  %v3390_v39 = vld [vmem:[#allocation5 + $0x370] sm:$0xf0] }
 0x148   :  { %v1151_v51 = vpop.f32.mrf.mxu3  ;;  %v1138_v60 = vadd.f32 %v1137_v45, %v1124_v50  ;;  %v3393_v42 = vor.u32 %v3719_v38, %v3390_v39  ;;  %v2997_v45 = vor.u32 %v3622_v33, %v2996_v32  ;;  %v3172_v50 = vld [vmem:[#allocation5 + $0x1a8] sm:$0xf] }
 0x149   :  { %2082 = vmatmul.bf16.vlgmr.msrb.gmra.mxu0 %v4018_v44  ;;  %v3316_v32 = vld [vmem:[#allocation5 + $0x2c8] sm:$0xf] }
 0x14a   :  { %2186 = vmatpush.bf16.msrb.mxu0 %v3077_v40  ;;  %v1165_v1 = vpop.f32.mrf.mxu0  ;;  %v1152_v3 = vadd.f32 %v1151_v51, %v1138_v60  ;;  %2176 = vmatpush.bf16.msra.mxu3 %v3393_v42  ;;  %v3173_v60 = vor.u32 %v3666_v53, %v3172_v50  ;;  %v3108_v42 = vld [vmem:[#allocation5 + $0x128] sm:$0xf]  ;;  %v399_v50 = vperm.slane %v4014_v30, 3  ;;  %v3033_v53 = vor.u32 %v3628_v47, %v3030_v48 }
 0x14b   :  { %v1166_v26 = vadd.f32 %v1165_v1, %v398_v11  ;;  %v3711_v1 = vld [vmem:[#allocation5 + $0x324] sm:$0xf] }
 0x14c   :  { %v1277_v14 = vmul.f32 0.2, %v1152_v3  ;;  %vm1269_vm11 = vcmp.gt.f32.partialorder %v1152_v3, 0.0 }
 0x14d   :  { %v1179_v22 = vpop.f32.mrf.mxu1 }
 0x14e   :  { %2187 = vmatpush.bf16.msrb.mxu0 %v3061_v61  ;;  %v1285_v27 = vsel %vm1269_vm11, %v1152_v3, %v1277_v14  ;;  %v1180_v43 = vadd.f32 %v1179_v22, %v1166_v26  ;;  %v2964_v61 = vld [vmem:[#allocation5 + $0x8] sm:$0xf]  ;;  %2177 = vmatpush.bf16.msra.mxu3 %v3377_v57 }
 0x14f   :  { %v1139_v6 = vpop.f32.mrf.mxu2  ;;  %v3284_v57 = vld [vmem:[#allocation5 + $0x288] sm:$0xf] }
 0x150   :  { %v1140_v9 = vadd.f32 %v1139_v6, %v1126_v2  ;;  %v1153_v55 = vpop.f32.mrf.mxu3  ;;  %v3358_v2 = vld [vmem:[#allocation5 + $0x330] sm:$0xf0] }
 0x151   :  { %v3361_v6 = vor.u32 %v3711_v1, %v3358_v2  ;;  %v3268_v1 = vld [vmem:[#allocation5 + $0x268] sm:$0xf]  ;;  %v3690_v2 = vld [vmem:[#allocation5 + $0x274] sm:$0xf0] }
 0x152   :  { %v1154_v15 = vadd.f32 %v1153_v55, %v1140_v9  ;;  %2188 = vmatpush.bf16.msrb.mxu0 %v3045_v4  ;;  %v1167_v36 = vpop.f32.mrf.mxu0  ;;  %v3640_v4 = vld [vmem:[#allocation5 + $0xec] sm:$0xf]  ;;  %v2965_v9 = vor.u32 %v3614_v62, %v2964_v61  ;;  %v3157_v55 = vor.u32 %v3662_v25, %v3156_v19  ;;  %v3014_v61 = vld [vmem:[#allocation5 + $0x78] sm:$0xf0] }
 0x153   :  { %v1168_v51 = vadd.f32 %v1167_v36, %v398_v11  ;;  %v3332_v11 = vld [vmem:[#allocation5 + $0x2e8] sm:$0xf]  ;;  %2178 = vmatpush.bf16.msra.mxu3 %v3361_v6  ;;  %v3632_v36 = vld [vmem:[#allocation5 + $0xac] sm:$0xf] }
 0x154   :  { %vm1273_vm12 = vcmp.gt.f32.partialorder %v1154_v15, 0.0  ;;  %v1281_v23 = vmul.f32 0.2, %v1154_v15  ;;  %v3333_v24 = vor.u32 %v3706_v12, %v3332_v11  ;;  %v3672_v19 = vld [vmem:[#allocation5 + $0x1ec] sm:$0xf] }
 0x155   :  { %v1181_v58 = vpop.f32.mrf.mxu1  ;;  %v3620_v6 = vld [vmem:[#allocation5 + $0x4c] sm:$0xf] }
 0x156   :  { %v1289_v28 = vsel %vm1273_vm12, %v1154_v15, %v1281_v23  ;;  %2189 = vmatpush.bf16.msrb.mxu0 %v3029_v16  ;;  %v1182_v63 = vadd.f32 %v1181_v58, %v1168_v51  ;;  %v3081_v15 = vor.u32 %v3640_v4, %v3078_v5  ;;  %v3707_v16 = vld [vmem:[#allocation5 + $0x304] sm:$0xf]  ;;  %v3141_v23 = vor.u32 %v3658_v10, %v3140_v7 }
 0x157   :  { %v4022_v35 = vpack.c.bf16 %v1289_v28, %v1285_v27  ;;  %v1193_v40 = vpop.f32.mrf.mxu2  ;;  %v3345_v21 = vor.u32 %v3707_v16, %v3342_v17  ;;  %v3065_v28 = vor.u32 %v3636_v18, %v3062_v20  ;;  %v3269_v10 = vor.u32 %v3690_v2, %v3268_v1  ;;  %v3616_v17 = vld [vmem:[#allocation5 + $0x2c] sm:$0xf]  ;;  %v2982_v18 = vld [vmem:[#allocation5 + $0x38] sm:$0xf0] }
 0x158   :  { %v1207_v41 = vpop.f32.mrf.mxu3  ;;  %v1194_v52 = vadd.f32 %v1193_v40, %v1180_v43  ;;  %v3317_v40 = vor.u32 %v3702_v34, %v3316_v32  ;;  %v3650_v43 = vld [vmem:[#allocation5 + $0x134] sm:$0xf0]  ;;  %v3664_v20 = vld [vmem:[#allocation5 + $0x1ac] sm:$0xf]  ;;  %v3126_v1 = vld [vmem:[#allocation5 + $0x158] sm:$0xf0] }
 0x159   :  { %2096 = vmatmul.bf16.vlgmr.msrb.gmra.mxu1 %v4022_v35  ;;  %2138 = vmatmul.bf16.vlgmr.msra.gmra.mxu0 %v4018_v44  ;;  %v3109_v51 = vor.u32 %v3650_v43, %v3108_v42  ;;  %v3682_v32 = vld [vmem:[#allocation5 + $0x234] sm:$0xf0]  ;;  %v3612_v34 = vld [vmem:[#allocation5 + $0xc] sm:$0xf]  ;;  %v3460_v43 = vld [vmem:[#allocation5 + $0x3e8] sm:$0xf] }
 0x15a   :  { %2190 = vmatpush.bf16.msrb.mxu0 %v3013_v29  ;;  %2200 = vmatpush.bf16.msrb.mxu1 %v3205_v31  ;;  %v1208_v0 = vadd.f32 %v1207_v41, %v1194_v52  ;;  %v3124_v29 = vld [vmem:[#allocation5 + $0x148] sm:$0xf]  ;;  %v3654_v31 = vld [vmem:[#allocation5 + $0x154] sm:$0xf0]  ;;  %v3049_v41 = vor.u32 %v3632_v36, %v3046_v37  ;;  %v2966_v36 = vld [vmem:[#allocation5 + $0x18] sm:$0xf0] }
 0x15b   :  { %2179 = vmatpush.bf16.msra.mxu3 %v3345_v21  ;;  %v3125_v39 = vor.u32 %v3654_v31, %v3124_v29  ;;  %v3174_v21 = vld [vmem:[#allocation5 + $0x1b8] sm:$0xf0]  ;;  %v3678_v42 = vld [vmem:[#allocation5 + $0x214] sm:$0xf0]  ;;  %v2969_v48 = vor.u32 %v3612_v34, %v2966_v36  ;;  %v3700_v2 = vld [vmem:[#allocation5 + $0x2cc] sm:$0xf] }
 0x15c   :  { %v1278_v13 = vmul.f32 0.2, %v1208_v0  ;;  %vm1270_vm13 = vcmp.gt.f32.partialorder %v1208_v0, 0.0  ;;  %v3177_v31 = vor.u32 %v3664_v20, %v3174_v21  ;;  %v3684_v34 = vld [vmem:[#allocation5 + $0x24c] sm:$0xf] }
 0x15d   :  { %v3254_v36 = vld [vmem:[#allocation5 + $0x258] sm:$0xf0] }
 0x15e   :  { %2191 = vmatpush.bf16.msrb.mxu0 %v2997_v45  ;;  %2201 = vmatpush.bf16.msrb.mxu1 %v3189_v46  ;;  %v1286_v26 = vsel %vm1270_vm13, %v1208_v0, %v1278_v13  ;;  %v3300_v45 = vld [vmem:[#allocation5 + $0x2a8] sm:$0xf]  ;;  %v3698_v46 = vld [vmem:[#allocation5 + $0x2b4] sm:$0xf0]  ;;  %v3093_v0 = vor.u32 %v3646_v56, %v3092_v54  ;;  %v3704_v54 = vld [vmem:[#allocation5 + $0x2ec] sm:$0xf] }
 0x15f   :  { %v1195_v3 = vpop.f32.mrf.mxu2  ;;  %v3301_v52 = vor.u32 %v3698_v46, %v3300_v45 }
 0x160   :  { %v1196_v49 = vadd.f32 %v1195_v3, %v1182_v63  ;;  %v1209_v8 = vpop.f32.mrf.mxu3  ;;  %v3206_v63 = vld [vmem:[#allocation5 + $0x1f8] sm:$0xf0] }
 0x161   :  { %v3209_v5 = vor.u32 %v3672_v19, %v3206_v63 }
 0x162   :  { %2192 = vmatpush.bf16.msrb.mxu0 %v2981_v59  ;;  %2202 = vmatpush.bf16.msrb.mxu1 %v3173_v60  ;;  %v1210_v14 = vadd.f32 %v1209_v8, %v1196_v49  ;;  %v3694_v59 = vld [vmem:[#allocation5 + $0x294] sm:$0xf0]  ;;  %v3624_v60 = vld [vmem:[#allocation5 + $0x6c] sm:$0xf]  ;;  %v2998_v49 = vld [vmem:[#allocation5 + $0x58] sm:$0xf0] }
 0x163   :  { %v3285_v30 = vor.u32 %v3694_v59, %v3284_v57  ;;  %v3017_v25 = vor.u32 %v3624_v60, %v3014_v61  ;;  %v3001_v13 = vor.u32 %v3620_v6, %v2998_v49  ;;  %v3334_v57 = vld [vmem:[#allocation5 + $0x2f8] sm:$0xf0]  ;;  %v3428_v49 = vld [vmem:[#allocation5 + $0x3a8] sm:$0xf] }
 0x164   :  { %vm1274_vm14 = vcmp.gt.f32.partialorder %v1210_v14, 0.0  ;;  %v1282_v22 = vmul.f32 0.2, %v1210_v14  ;;  %v3337_v63 = vor.u32 %v3704_v54, %v3334_v57  ;;  %v3446_v57 = vld [vmem:[#allocation5 + $0x3d8] sm:$0xf0] }
 0x166   :  { %2193 = vmatpush.bf16.msrb.mxu0 %v2965_v9  ;;  %2203 = vmatpush.bf16.msrb.mxu1 %v3157_v55  ;;  %v1290_v27 = vsel %vm1274_vm14, %v1210_v14, %v1282_v22  ;;  %v3668_v9 = vld [vmem:[#allocation5 + $0x1cc] sm:$0xf]  ;;  %v3190_v55 = vld [vmem:[#allocation5 + $0x1d8] sm:$0xf0]  ;;  %v3252_v14 = vld [vmem:[#allocation5 + $0x248] sm:$0xf] }
 0x167   :  { %v4026_v33 = vpack.c.bf16 %v1290_v27, %v1286_v26  ;;  %v3193_v16 = vor.u32 %v3668_v9, %v3190_v55  ;;  %v2985_v27 = vor.u32 %v3616_v17, %v2982_v18  ;;  %v3110_v9 = vld [vmem:[#allocation5 + $0x138] sm:$0xf0]  ;;  %v3696_v55 = vld [vmem:[#allocation5 + $0x2ac] sm:$0xf] }
 0x168   :  { %v3692_v17 = vld [vmem:[#allocation5 + $0x28c] sm:$0xf]  ;;  %v3286_v18 = vld [vmem:[#allocation5 + $0x298] sm:$0xf0] }
 0x169   :  { %2152 = vmatmul.bf16.vlgmr.msra.gmra.mxu1 %v4022_v35  ;;  %2194 = vmatmul.bf16.vlgmr.msrb.gmra.mxu0 %v4018_v44 }
 0x16a   :  { %2242 = vmatpush.bf16.msra.mxu0 %v3081_v15  ;;  %v1221_v38 = vpop.f32.mrf.mxu0  ;;  %2110 = vmatmul.bf16.vlgmr.msrb.gmra.mxu2 %v4026_v33  ;;  %v3686_v15 = vld [vmem:[#allocation5 + $0x254] sm:$0xf0] }
 0x16b   :  { %2204 = vmatpush.bf16.msrb.mxu1 %v3141_v23  ;;  %2214 = vmatpush.bf16.msrb.mxu2 %v3333_v24  ;;  %v1222_v62 = vadd.f32 %v1221_v38, %v399_v50  ;;  %v3253_v23 = vor.u32 %v3686_v15, %v3252_v14  ;;  %v3660_v38 = vld [vmem:[#allocation5 + $0x18c] sm:$0xf]  ;;  %v3726_v14 = vld [vmem:[#allocation5 + $0x394] sm:$0xf0] }
 0x16c   :  { %v3644_v15 = vld [vmem:[#allocation5 + $0x10c] sm:$0xf] }
 0x16d   :  { %v1235_v58 = vpop.f32.mrf.mxu1 }
 0x16e   :  { %2243 = vmatpush.bf16.msra.mxu0 %v3065_v28  ;;  %v1236_v7 = vadd.f32 %v1235_v58, %v1222_v62  ;;  %v3236_v28 = vld [vmem:[#allocation5 + $0x228] sm:$0xf] }
 0x16f   :  { %2205 = vmatpush.bf16.msrb.mxu1 %v3125_v39  ;;  %2215 = vmatpush.bf16.msrb.mxu2 %v3317_v40  ;;  %v3158_v39 = vld [vmem:[#allocation5 + $0x198] sm:$0xf0]  ;;  %v3237_v47 = vor.u32 %v3682_v32, %v3236_v28  ;;  %v3718_v32 = vld [vmem:[#allocation5 + $0x354] sm:$0xf0] }
 0x172   :  { %2244 = vmatpush.bf16.msra.mxu0 %v3049_v41  ;;  %v1223_v3 = vpop.f32.mrf.mxu0  ;;  %v3220_v41 = vld [vmem:[#allocation5 + $0x208] sm:$0xf] }
 0x173   :  { %2206 = vmatpush.bf16.msrb.mxu1 %v3109_v51  ;;  %2216 = vmatpush.bf16.msrb.mxu2 %v3301_v52  ;;  %v1224_v11 = vadd.f32 %v1223_v3, %v399_v50  ;;  %v3738_v50 = vld [vmem:[#allocation5 + $0x3f4] sm:$0xf0]  ;;  %v3656_v51 = vld [vmem:[#allocation5 + $0x16c] sm:$0xf]  ;;  %v3161_v52 = vor.u32 %v3660_v38, %v3158_v39  ;;  %v3221_v58 = vor.u32 %v3678_v42, %v3220_v41  ;;  %v3318_v3 = vld [vmem:[#allocation5 + $0x2d8] sm:$0xf0] }
 0x174   :  { %v3461_v61 = vor.u32 %v3738_v50, %v3460_v43  ;;  %v3321_v6 = vor.u32 %v3700_v2, %v3318_v3  ;;  %v3257_v38 = vor.u32 %v3684_v34, %v3254_v36  ;;  %v3364_v39 = vld [vmem:[#allocation5 + $0x328] sm:$0xf]  ;;  %v3680_v41 = vld [vmem:[#allocation5 + $0x22c] sm:$0xf]  ;;  %v3238_v42 = vld [vmem:[#allocation5 + $0x238] sm:$0xf0] }
 0x175   :  { %v1237_v22 = vpop.f32.mrf.mxu1  ;;  %v3222_v50 = vld [vmem:[#allocation5 + $0x218] sm:$0xf0]  ;;  %v3716_v2 = vld [vmem:[#allocation5 + $0x34c] sm:$0xf] }
 0x176   :  { %2245 = vmatpush.bf16.msra.mxu0 %v3033_v53  ;;  %v1238_v24 = vadd.f32 %v1237_v22, %v1224_v11  ;;  %v3142_v53 = vld [vmem:[#allocation5 + $0x178] sm:$0xf0]  ;;  %v3289_v22 = vor.u32 %v3692_v17, %v3286_v18 }
 0x177   :  { %v1249_v4 = vpop.f32.mrf.mxu2  ;;  %2207 = vmatpush.bf16.msrb.mxu1 %v3093_v0  ;;  %2217 = vmatpush.bf16.msrb.mxu2 %v3285_v30  ;;  %v3145_v19 = vor.u32 %v3656_v51, %v3142_v53  ;;  %v3444_v0 = vld [vmem:[#allocation5 + $0x3c8] sm:$0xf]  ;;  %v3734_v30 = vld [vmem:[#allocation5 + $0x3d4] sm:$0xf0]  ;;  %v3736_v51 = vld [vmem:[#allocation5 + $0x3ec] sm:$0xf] }
 0x178   :  { %v1263_v8 = vpop.f32.mrf.mxu3  ;;  %v1250_v12 = vadd.f32 %v1249_v4, %v1236_v7  ;;  %v3445_v4 = vor.u32 %v3734_v30, %v3444_v0  ;;  %v3730_v7 = vld [vmem:[#allocation5 + $0x3b4] sm:$0xf0]  ;;  %v3720_v30 = vld [vmem:[#allocation5 + $0x36c] sm:$0xf]  ;;  %v3382_v3 = vld [vmem:[#allocation5 + $0x358] sm:$0xf0] }
 0x179   :  { %v3429_v11 = vor.u32 %v3730_v7, %v3428_v49  ;;  %v3708_v7 = vld [vmem:[#allocation5 + $0x30c] sm:$0xf] }
 0x17a   :  { %2246 = vmatpush.bf16.msra.mxu0 %v3017_v25  ;;  %2208 = vmatmul.bf16.vlgmr.msrb.gmra.mxu1 %v4022_v35  ;;  %v1264_v26 = vadd.f32 %v1263_v8, %v1250_v12  ;;  %v3652_v25 = vld [vmem:[#allocation5 + $0x14c] sm:$0xf] }
 0x17b   :  { %2256 = vmatpush.bf16.msra.mxu1 %v3209_v5  ;;  %2166 = vmatmul.bf16.vlgmr.msra.gmra.mxu2 %v4026_v33  ;;  %v3129_v5 = vor.u32 %v3652_v25, %v3126_v1  ;;  %v3648_v8 = vld [vmem:[#allocation5 + $0x12c] sm:$0xf]  ;;  %v3398_v25 = vld [vmem:[#allocation5 + $0x378] sm:$0xf0] }
 0x17c   :  { %2218 = vmatpush.bf16.msrb.mxu2 %v3269_v10  ;;  %v1279_v45 = vmul.f32 0.2, %v1264_v26  ;;  %vm1271_vm15 = vcmp.gt.f32.partialorder %v1264_v26, 0.0  ;;  %v3302_v10 = vld [vmem:[#allocation5 + $0x2b8] sm:$0xf0]  ;;  %v3401_v1 = vor.u32 %v3720_v30, %v3398_v25 }
 0x17d   :  { %v3305_v12 = vor.u32 %v3696_v55, %v3302_v10 }
 0x17e   :  { %2247 = vmatpush.bf16.msra.mxu0 %v3001_v13  ;;  %v1287_v59 = vsel %vm1271_vm15, %v1264_v26, %v1279_v45  ;;  %v3412_v13 = vld [vmem:[#allocation5 + $0x388] sm:$0xf]  ;;  %v3688_v26 = vld [vmem:[#allocation5 + $0x26c] sm:$0xf]  ;;  %v3241_v45 = vor.u32 %v3680_v41, %v3238_v42  ;;  %v2322_v41 = vld [vmem:[%s4072_s7] sm:$0xf] }
 0x17f   :  { %2257 = vmatpush.bf16.msra.mxu1 %v3193_v16  ;;  %v1251_v29 = vpop.f32.mrf.mxu2  ;;  %v3094_v16 = vld [vmem:[#allocation5 + $0x118] sm:$0xf0]  ;;  %v3413_v20 = vor.u32 %v3726_v14, %v3412_v13 }
 0x180   :  { %v1252_v37 = vadd.f32 %v1251_v29, %v1238_v24  ;;  %v1265_v40 = vpop.f32.mrf.mxu3  ;;  %2219 = vmatpush.bf16.msrb.mxu2 %v3253_v23  ;;  %v3097_v21 = vor.u32 %v3644_v15, %v3094_v16  ;;  %v3396_v23 = vld [vmem:[#allocation5 + $0x368] sm:$0xf]  ;;  %v3722_v24 = vld [vmem:[#allocation5 + $0x374] sm:$0xf0] }
 0x181   :  { %v3397_v28 = vor.u32 %v3722_v24, %v3396_v23 }
 0x182   :  { %v1266_v46 = vadd.f32 %v1265_v40, %v1252_v37  ;;  %2248 = vmatpush.bf16.msra.mxu0 %v2985_v27  ;;  %v3270_v27 = vld [vmem:[#allocation5 + $0x278] sm:$0xf0]  ;;  %v3714_v40 = vld [vmem:[#allocation5 + $0x334] sm:$0xf0] }
 0x183   :  { %2258 = vmatpush.bf16.msra.mxu1 %v3177_v31  ;;  %v3273_v29 = vor.u32 %v3688_v26, %v3270_v27  ;;  %v3380_v31 = vld [vmem:[#allocation5 + $0x348] sm:$0xf]  ;;  %v3365_v43 = vor.u32 %v3714_v40, %v3364_v39  ;;  %v4049_v27 = vld [vmem:[%s4071_s6] sm:$0xf] }
 0x184   :  { %vm1275_vm0 = vcmp.gt.f32.partialorder %v1266_v46, 0.0  ;;  %v1283_v56 = vmul.f32 0.2, %v1266_v46  ;;  %2220 = vmatpush.bf16.msrb.mxu2 %v3237_v47  ;;  %v3381_v37 = vor.u32 %v3718_v32, %v3380_v31  ;;  %v3710_v47 = vld [vmem:[#allocation5 + $0x314] sm:$0xf0]  ;;  %v1428_v31 = vperm.slane %v4049_v27, 2 }
 0x186   :  { %v1291_v60 = vsel %vm1275_vm0, %v1266_v46, %v1283_v56  ;;  %2249 = vmatpush.bf16.msra.mxu0 %v2969_v48  ;;  %v3348_v46 = vld [vmem:[#allocation5 + $0x308] sm:$0xf]  ;;  %v3676_v48 = vld [vmem:[#allocation5 + $0x20c] sm:$0xf] }
 0x187   :  { %v4034_v62 = vpack.c.bf16 %v1291_v60, %v1287_v59  ;;  %2259 = vmatpush.bf16.msra.mxu1 %v3161_v52  ;;  %v3462_v52 = vld [vmem:[#allocation5 + $0x3f8] sm:$0xf0]  ;;  %v3349_v53 = vor.u32 %v3710_v47, %v3348_v46  ;;  %v3732_v56 = vld [vmem:[#allocation5 + $0x3cc] sm:$0xf] }
 0x188   :  { %2221 = vmatpush.bf16.msrb.mxu2 %v3221_v58  ;;  %v3465_v54 = vor.u32 %v3736_v51, %v3462_v52  ;;  %v3449_v58 = vor.u32 %v3732_v56, %v3446_v57  ;;  %v3728_v59 = vld [vmem:[#allocation5 + $0x3ac] sm:$0xf]  ;;  %v3430_v60 = vld [vmem:[#allocation5 + $0x3b8] sm:$0xf0]  ;;  %v1429_v56 = vperm.slane %v4049_v27, 3 }
 0x189   :  { %2124 = vmatmul.bf16.vlgmr.msrb.gmra.mxu3 %v4034_v62  ;;  %2250 = vmatmul.bf16.vlgmr.msra.gmra.mxu0 %v4018_v44  ;;  %v3113_v44 = vor.u32 %v3648_v8, %v3110_v9 }
 0x18a   :  { %2228 = vmatpush.bf16.msrb.mxu3 %v3461_v61  ;;  %v3433_v61 = vor.u32 %v3728_v59, %v3430_v60 }
 0x18b   :  { %2260 = vmatpush.bf16.msra.mxu1 %v3145_v19  ;;  %2222 = vmatmul.bf16.vlgmr.msrb.gmra.mxu2 %v4026_v33  ;;  %v3724_v19 = vld [vmem:[#allocation5 + $0x38c] sm:$0xf] }
 0x18c   :  { %2270 = vmatpush.bf16.msra.mxu2 %v3337_v63  ;;  %v3414_v63 = vld [vmem:[#allocation5 + $0x398] sm:$0xf0] }
 0x18d   :  { %v3417_v0 = vor.u32 %v3724_v19, %v3414_v63 }
 0x18e   :  { %2229 = vmatpush.bf16.msrb.mxu3 %v3445_v4  ;;  %v3385_v4 = vor.u32 %v3716_v2, %v3382_v3 }
 0x18f   :  { %2261 = vmatpush.bf16.msra.mxu1 %v3129_v5  ;;  %v3712_v5 = vld [vmem:[#allocation5 + $0x32c] sm:$0xf] }
 0x190   :  { %2271 = vmatpush.bf16.msra.mxu2 %v3321_v6  ;;  %v3366_v6 = vld [vmem:[#allocation5 + $0x338] sm:$0xf0] }
 0x191   :  { %v3369_v49 = vor.u32 %v3712_v5, %v3366_v6 }
 0x192   :  { %2230 = vmatpush.bf16.msrb.mxu3 %v3429_v11 }
 0x193   :  { %2262 = vmatpush.bf16.msra.mxu1 %v3113_v44 }
 0x194   :  { %2272 = vmatpush.bf16.msra.mxu2 %v3305_v12 }
 0x196   :  { %2231 = vmatpush.bf16.msrb.mxu3 %v3413_v20 }
 0x197   :  { %2263 = vmatpush.bf16.msra.mxu1 %v3097_v21 }
 0x198   :  { %2273 = vmatpush.bf16.msra.mxu2 %v3289_v22 }
 0x199   :  { %2180 = vmatmul.bf16.vlgmr.msra.gmra.mxu3 %v4034_v62 }
 0x19a   :  { %2232 = vmatpush.bf16.msrb.mxu3 %v3397_v28  ;;  %2264 = vmatmul.bf16.vlgmr.msra.gmra.mxu1 %v4022_v35  ;;  %v3225_v35 = vor.u32 %v3676_v48, %v3222_v50  ;;  %v1427_v28 = vperm.slane %v4049_v27, 1  ;;  %v2323_v48 = vunpack.c.l.bf16 %v2322_v41 }
 0x19c   :  { %2274 = vmatpush.bf16.msra.mxu2 %v3273_v29  ;;  %v1426_v29 = vperm.slane %v4049_v27, 0  ;;  %v2325_v59 = vperm.slane %v2323_v48, 0  ;;  %v2327_v3 = vperm.slane %v2323_v48, 4 }
 0x19e   :  { %2233 = vmatpush.bf16.msrb.mxu3 %v3381_v37 }
 0x1a0   :  { %2275 = vmatpush.bf16.msra.mxu2 %v3257_v38 }
 0x1a2   :  { %2234 = vmatpush.bf16.msrb.mxu3 %v3365_v43 }
 0x1a4   :  { %2276 = vmatpush.bf16.msra.mxu2 %v3241_v45 }
 0x1a6   :  { %2235 = vmatpush.bf16.msrb.mxu3 %v3349_v53 }
 0x1a8   :  { %2277 = vmatpush.bf16.msra.mxu2 %v3225_v35 }
 0x1a9   :  { %2236 = vmatmul.bf16.vlgmr.msrb.gmra.mxu3 %v4034_v62 }
 0x1aa   :  { %2284 = vmatpush.bf16.msra.mxu3 %v3465_v54 }
 0x1ab   :  { %2278 = vmatmul.bf16.vlgmr.msra.gmra.mxu2 %v4026_v33  ;;  %v3350_v33 = vld [vmem:[#allocation5 + $0x318] sm:$0xf0] }
 0x1ac   :  { %v3353_v8 = vor.u32 %v3708_v7, %v3350_v33  ;;  %v2333_v7 = vperm.slane %v2325_v59, 0 }
 0x1ae   :  { %2285 = vmatpush.bf16.msra.mxu3 %v3449_v58 }
 0x1b2   :  { %2286 = vmatpush.bf16.msra.mxu3 %v3433_v61  ;;  %v2326_v61 = vperm.slane %v2323_v48, 2 }
 0x1b4   :  { %v2334_v33 = vperm.slane %v2326_v61, 0 }
 0x1b6   :  { %2287 = vmatpush.bf16.msra.mxu3 %v3417_v0 }
 0x1ba   :  { %2288 = vmatpush.bf16.msra.mxu3 %v3401_v1 }
 0x1be   :  { %2289 = vmatpush.bf16.msra.mxu3 %v3385_v4 }
 0x1c2   :  { %2290 = vmatpush.bf16.msra.mxu3 %v3369_v49 }
 0x1c6   :  { %2291 = vmatpush.bf16.msra.mxu3 %v3353_v8  ;;  %v2083_v9 = vpop.f32.mrf.mxu0 }
 0x1c7   :  { %v2084_v37 = vadd.f32 %v2083_v9, %v1426_v29 }
 0x1c9   :  { %2292 = vmatmul.bf16.vlgmr.msra.gmra.mxu3 %v4034_v62 }
 0x1ce   :  { %v2085_v11 = vpop.f32.mrf.mxu0 }
 0x1cf   :  { %v2086_v35 = vadd.f32 %v2085_v11, %v1426_v29 }
 0x1d6   :  { %v2097_v55 = vpop.f32.mrf.mxu1  ;;  %v2139_v14 = vpop.f32.mrf.mxu0 }
 0x1d7   :  { %v2140_v36 = vadd.f32 %v2139_v14, %v1427_v28  ;;  %v2098_v42 = vadd.f32 %v2097_v55, %v2084_v37  ;;  %v2335_v14 = vperm.slane %v2327_v3, 0 }
 0x1de   :  { %v2099_v12 = vpop.f32.mrf.mxu1  ;;  %v2141_v18 = vpop.f32.mrf.mxu0 }
 0x1df   :  { %v2142_v54 = vadd.f32 %v2141_v18, %v1427_v28  ;;  %v2100_v63 = vadd.f32 %v2099_v12, %v2086_v35  ;;  %v2328_v12 = vperm.slane %v2323_v48, 6 }
 0x1e1   :  { %v2336_v28 = vperm.slane %v2328_v12, 0 }
 0x1e6   :  { %v2153_v16 = vpop.f32.mrf.mxu1  ;;  %v2195_v23 = vpop.f32.mrf.mxu0 }
 0x1e7   :  { %v2154_v39 = vadd.f32 %v2153_v16, %v2140_v36  ;;  %v2196_v40 = vadd.f32 %v2195_v23, %v1428_v31 }
 0x1ed   :  { %v2111_v10 = vpop.f32.mrf.mxu2 }
 0x1ee   :  { %v2155_v21 = vpop.f32.mrf.mxu1  ;;  %v2197_v32 = vpop.f32.mrf.mxu0  ;;  %v2112_v47 = vadd.f32 %v2111_v10, %v2098_v42 }
 0x1ef   :  { %v2198_v58 = vadd.f32 %v2197_v32, %v1428_v31  ;;  %v2156_v0 = vadd.f32 %v2155_v21, %v2142_v54 }
 0x1f5   :  { %v2113_v13 = vpop.f32.mrf.mxu2 }
 0x1f6   :  { %v2114_v49 = vadd.f32 %v2113_v13, %v2100_v63 }
 0x1f7   :  { %v2209_v26 = vpop.f32.mrf.mxu1 }
 0x1f8   :  { %v2210_v45 = vadd.f32 %v2209_v26, %v2196_v40 }
 0x1fe   :  { %v2167_v17 = vpop.f32.mrf.mxu2 }
 0x1ff   :  { %v2211_v38 = vpop.f32.mrf.mxu1  ;;  %v2168_v46 = vadd.f32 %v2167_v17, %v2154_v39 }
 0x200   :  { %v2212_v25 = vadd.f32 %v2211_v38, %v2198_v58  ;;  %v3743_v58 = vld [vmem:[#allocation2] ss:$0 sm:$0xff] }
 0x206   :  { %v2169_v22 = vpop.f32.mrf.mxu2  ;;  %v2251_v52 = vpop.f32.mrf.mxu0 }
 0x207   :  { %v2252_v4 = vadd.f32 %v2251_v52, %v1429_v56  ;;  %v2170_v5 = vadd.f32 %v2169_v22, %v2156_v0 }
 0x20c   :  { %v2125_v44 = vpop.f32.mrf.mxu3 }
 0x20d   :  { %v2126_v53 = vadd.f32 %v2125_v44, %v2112_v47 }
 0x20e   :  { %v2223_v62 = vpop.f32.mrf.mxu2 }
 0x20f   :  { %v2224_v50 = vadd.f32 %v2223_v62, %v2210_v45  ;;  %v2306_v1 = vmul.f32 0.2, %v2126_v53  ;;  %vm2298_vm2 = vcmp.gt.f32.partialorder %v2126_v53, 0.0 }
 0x211   :  { %v2314_v11 = vsel %vm2298_vm2, %v2126_v53, %v2306_v1 }
 0x212   :  { %v2337_v26 = vmul.f32 %v2333_v7, %v2314_v11 }
 0x214   :  { %v4044_v15 = vpop.f32.mrf.mxu3 }
 0x215   :  { %v2128_v44 = vadd.f32 %v4044_v15, %v2114_v49 }
 0x216   :  { %v2225_v43 = vpop.f32.mrf.mxu2 }
 0x217   :  { %v2265_v60 = vpop.f32.mrf.mxu1  ;;  %v2226_v9 = vadd.f32 %v2225_v43, %v2212_v25  ;;  %v2310_v62 = vmul.f32 0.2, %v2128_v44  ;;  %vm2302_vm6 = vcmp.gt.f32.partialorder %v2128_v44, 0.0 }
 0x218   :  { %v2266_v8 = vadd.f32 %v2265_v60, %v2252_v4 }
 0x219   :  { %v2318_v41 = vsel %vm2302_vm6, %v2128_v44, %v2310_v62 }
 0x21c   :  { %v2181_v20 = vpop.f32.mrf.mxu3 }
 0x21d   :  { %v2182_v51 = vadd.f32 %v2181_v20, %v2168_v46  ;;  %v2253_v20 = vpop.f32.mrf.mxu0 }
 0x21f   :  { %v2307_v30 = vmul.f32 0.2, %v2182_v51  ;;  %vm2299_vm1 = vcmp.gt.f32.partialorder %v2182_v51, 0.0  ;;  %v2267_v27 = vpop.f32.mrf.mxu1 }
 0x221   :  { %v2315_v55 = vsel %vm2299_vm1, %v2182_v51, %v2307_v30 }
 0x222   :  { %v2338_v22 = vmul.f32 %v2334_v33, %v2315_v55 }
 0x224   :  { %v2183_v24 = vpop.f32.mrf.mxu3 }
 0x225   :  { %v2184_v10 = vadd.f32 %v2183_v24, %v2170_v5  ;;  %v2254_v24 = vadd.f32 %v2253_v20, %v1429_v56 }
 0x227   :  { %v2311_v23 = vmul.f32 0.2, %v2184_v10  ;;  %vm2303_vm4 = vcmp.gt.f32.partialorder %v2184_v10, 0.0  ;;  %v2268_v36 = vadd.f32 %v2267_v27, %v2254_v24 }
 0x229   :  { %v2319_v37 = vsel %vm2303_vm4, %v2184_v10, %v2311_v23 }
 0x22a   :  { %v2342_v45 = vmul.f32 %v2334_v33, %v2319_v37 }
 0x22c   :  { %v2237_v34 = vpop.f32.mrf.mxu3 }
 0x22d   :  { %v2238_v57 = vadd.f32 %v2237_v34, %v2224_v50  ;;  %v2345_v34 = vadd.f32 %v2338_v22, %v2337_v26  ;;  %v2341_v50 = vmul.f32 %v2333_v7, %v2318_v41 }
 0x22e   :  { %v2279_v2 = vpop.f32.mrf.mxu2 }
 0x22f   :  { %v2308_v6 = vmul.f32 0.2, %v2238_v57  ;;  %vm2300_vm3 = vcmp.gt.f32.partialorder %v2238_v57, 0.0  ;;  %v2280_v16 = vadd.f32 %v2279_v2, %v2266_v8  ;;  %v2350_v53 = vadd.f32 %v2342_v45, %v2341_v50 }
 0x231   :  { %v2316_v18 = vsel %vm2300_vm3, %v2238_v57, %v2308_v6 }
 0x232   :  { %v2339_v29 = vmul.f32 %v2335_v14, %v2316_v18 }
 0x234   :  { %v2239_v19 = vpop.f32.mrf.mxu3  ;;  %v2346_v40 = vadd.f32 %v2345_v34, %v2339_v29 }
 0x235   :  { %v2240_v17 = vadd.f32 %v2239_v19, %v2226_v9 }
 0x236   :  { %v2281_v32 = vpop.f32.mrf.mxu2 }
 0x237   :  { %v2312_v31 = vmul.f32 0.2, %v2240_v17  ;;  %vm2304_vm7 = vcmp.gt.f32.partialorder %v2240_v17, 0.0  ;;  %v2282_v43 = vadd.f32 %v2281_v32, %v2268_v36 }
 0x239   :  { %v2320_v42 = vsel %vm2304_vm7, %v2240_v17, %v2312_v31 }
 0x23a   :  { %v2343_v51 = vmul.f32 %v2335_v14, %v2320_v42 }
 0x23c   :  { %v2351_v56 = vadd.f32 %v2350_v53, %v2343_v51 }
 0x24c   :  { %v2293_v21 = vpop.f32.mrf.mxu3 }
 0x24d   :  { %v2294_v13 = vadd.f32 %v2293_v21, %v2280_v16 }
 0x24f   :  { %vm2301_vm5 = vcmp.gt.f32.partialorder %v2294_v13, 0.0  ;;  %v2309_v15 = vmul.f32 0.2, %v2294_v13 }
 0x251   :  { %v2317_v38 = vsel %vm2301_vm5, %v2294_v13, %v2309_v15 }
 0x252   :  { %v2340_v39 = vmul.f32 %v2336_v28, %v2317_v38 }
 0x254   :  { %v2295_v46 = vpop.f32.mrf.mxu3  ;;  %v2347_v47 = vadd.f32 %v2346_v40, %v2340_v39 }
 0x255   :  { %v2296_v48 = vadd.f32 %v2295_v46, %v2282_v43 }
 0x256   :  { %2348 = vadd.xlane.f32.xlu0 %v2347_v47 }
 0x257   :  { %vm2305_vm8 = vcmp.gt.f32.partialorder %v2296_v48, 0.0  ;;  %v2313_v52 = vmul.f32 0.2, %v2296_v48 }
 0x259   :  { %v2321_v35 = vsel %vm2305_vm8, %v2296_v48, %v2313_v52 }
 0x25a   :  { %v2344_v54 = vmul.f32 %v2336_v28, %v2321_v35 }
 0x25c   :  { %v2352_v57 = vadd.f32 %v2351_v56, %v2344_v54 }
 0x25e   :  { %2353 = vadd.xlane.f32.xlu0 %v2352_v57 }
 0x2c9   :  { %v2349_v59 = vpop.xlane.xlu0 %2348 }
 0x2ca   :  { %v2359_v60 = vadd.f32 %v3743_v58, %v2349_v59 }
 0x2cc   :  { %2362 = vst.msk [vmem:[%s4074_s9] sm:$0xff] %vm2361_vm9, %v2359_v60 }
 0x2d1   :  { %v2354_v61 = vpop.xlane.xlu0 %2353 }
 0x2d2   :  { %v2360_v19 = vadd.f32 %v3743_v58, %v2354_v61 }
 0x2d4   :  { %2363 = vst.msk [vmem:[%s4074_s9 + $0x8] sm:$0xff] %vm2361_vm9, %v2360_v19 }
 0x2d5   :  { %2368 = vsyncpa [#allocation4], 1 }
 0x2d6   :  { %2369 = vsyncpa [#allocation6], 1 }

</bundles_post_ra>
